<compile_context>
chip_gen: v6e
topology: v6e:2x2x1
jax: 0.10.0
libtpu: 0.0.40
codegen_flags: <defaults>
</compile_context>

<pallas_src>
import functools

import jax
import jax.numpy as jnp
from jax.experimental import pallas as pl
from jax.experimental.pallas import tpu as pltpu


def _round_up(x, m):
    return ((x + m - 1) // m) * m


# --------------------------- Pallas kernel -----------------------------------

def phrase_encoder_kernel(hl_ref, hr_ref,
                          wsl_ref, wsr_ref, bdiff_ref,
                          wl_ref, bl_ref, wr_ref, br_ref,
                          wrep_ref, brep_ref,
                          o_ref):
    hl = hl_ref[...]                                   # (TB, D), input dtype
    hr = hr_ref[...]                                   # (TB, D)
    hl_f32 = hl.astype(jnp.float32)
    hr_f32 = hr.astype(jnp.float32)

    # Attention scores; the 2-way softmax is a sigmoid of the score gap:
    #   softmax([a, b])[0] == sigmoid(a - b).
    s_gap = (jnp.sum(hl_f32 * wsl_ref[...], axis=-1, keepdims=True)
             - jnp.sum(hr_f32 * wsr_ref[...], axis=-1, keepdims=True)
             + bdiff_ref[0, 0])                        # (TB, 1), f32
    w_l = jax.nn.sigmoid(s_gap)                        # softmax weight on left
    w_r = 1.0 - w_l                                    # softmax weight on right

    # MXU GEMMs with f32 accumulation; operands stay in the streaming dtype.
    v_l = jnp.dot(hl, wl_ref[...], preferred_element_type=jnp.float32) + bl_ref[...]
    v_r = jnp.dot(hr, wr_ref[...], preferred_element_type=jnp.float32) + br_ref[...]

    h_hat = w_l * v_l + w_r * v_r                      # (TB, D), f32

    rep = jnp.dot(h_hat.astype(wrep_ref.dtype), wrep_ref[...],
                  preferred_element_type=jnp.float32) + brep_ref[...]
    o_ref[...] = (jnp.maximum(rep, 0.0) + h_hat).astype(o_ref.dtype)


# --------------------------- param preparation --------------------------------

def prepare_phrase_encoder_params(params, compute_dtype=jnp.bfloat16):
    """One-time hoist of the transposes / casts out of the per-call path.

    PyTorch nn.Linear stores W as (out, in) and computes x @ W.T + b.
    """
    D = params['lin_l_w'].shape[1]
    return dict(
        wsl=params['att_l_w'].reshape(1, D).astype(jnp.float32),
        wsr=params['att_r_w'].reshape(1, D).astype(jnp.float32),
        # Only the score-bias *difference* matters for the 2-way softmax.
        bdiff=(params['att_l_b'] - params['att_r_b']).reshape(1, 1).astype(jnp.float32),
        wl=jnp.transpose(params['lin_l_w']).astype(compute_dtype),
        bl=params['lin_l_b'].reshape(1, D).astype(jnp.float32),
        wr=jnp.transpose(params['lin_r_w']).astype(compute_dtype),
        br=params['lin_r_b'].reshape(1, D).astype(jnp.float32),
        wrep=jnp.transpose(params['lin_rep_w']).astype(compute_dtype),
        brep=params['lin_rep_b'].reshape(1, D).astype(jnp.float32),
    )


# --------------------------- wrapper ------------------------------------------

@functools.partial(jax.jit, static_argnames=("block_rows",))
def phrase_level_encoder_forward(h_left, h_right, prepared, *, block_rows=1024):
    """h_left, h_right: (B, h_dim) -> (B, h_dim) in the input dtype."""
    B, D = h_left.shape
    assert h_right.shape == (B, D)

    # Tile choice: as large as possible (HBM-bound kernel), but prefer >=4 row
    # tiles (>=2 per TensorCore on v7x) when the batch allows it, and never
    # larger than the sublane-rounded batch.
    TB = block_rows
    while TB >= 512 and pl.cdiv(B, TB) < 4:
        TB //= 2
    TB = min(TB, _round_up(B, 8))
    grid_rows = pl.cdiv(B, TB)          # ragged tail handled by Pallas (masked writes)

    row = lambda i: (i, 0)              # streamed batch tiles
    rep0 = lambda i: (0, 0)             # weights/biases resident across the grid

    itemsize = jnp.dtype(h_left.dtype).itemsize
    w_itemsize = jnp.dtype(prepared['wl'].dtype).itemsize
    cost = pl.CostEstimate(
        flops=6 * B * D * D,                                     # three DxD GEMMs
        transcendentals=B,                                       # one sigmoid per row
        bytes_accessed=3 * B * D * itemsize + 3 * D * D * w_itemsize,
    )

    out = pl.pallas_call(
        phrase_encoder_kernel,
        out_shape=jax.ShapeDtypeStruct((B, D), h_left.dtype),
        grid=(grid_rows,),
        in_specs=[
            pl.BlockSpec((TB, D), row),                               # h_left tile
            pl.BlockSpec((TB, D), row),                               # h_right tile
            pl.BlockSpec((1, D), rep0),                               # att_score_l weight row
            pl.BlockSpec((1, D), rep0),                               # att_score_r weight row
            pl.BlockSpec(memory_space=pltpu.MemorySpace.SMEM),        # att bias gap (scalar)
            pl.BlockSpec((D, D), rep0),                               # lin_l weight
            pl.BlockSpec((1, D), rep0),                               # lin_l bias
            pl.BlockSpec((D, D), rep0),                               # lin_r weight
            pl.BlockSpec((1, D), rep0),                               # lin_r bias
            pl.BlockSpec((D, D), rep0),                               # lin_rep weight
            pl.BlockSpec((1, D), rep0),                               # lin_rep bias
        ],
        out_specs=pl.BlockSpec((TB, D), row),
        compiler_params=pltpu.CompilerParams(dimension_semantics=("parallel",)),
        cost_estimate=cost,
    )(h_left, h_right,
      prepared['wsl'], prepared['wsr'], prepared['bdiff'],
      prepared['wl'], prepared['bl'], prepared['wr'], prepared['br'],
      prepared['wrep'], prepared['brep'])
    return out


# --------------------------- plain-JAX reference ------------------------------

def phrase_level_encoder_reference(h_left, h_right, params):
    # TODO(synk): the original PyTorch forward calls
    #   torch.matmul(values, self_weights.unsqueeze(1))
    # which is shape-incompatible for h_dim > 1; we implement the evidently
    # intended weighted (softmax) combination of lin_l/lin_r outputs.
    def linear(x, w, b):
        return x @ w.T + b

    s_l = linear(h_left, params['att_l_w'], params['att_l_b'])    # (B, 1)
    s_r = linear(h_right, params['att_r_w'], params['att_r_b'])   # (B, 1)
    weights = jax.nn.softmax(jnp.concatenate([s_l, s_r], axis=-1), axis=-1)  # (B, 2)
    v_l = linear(h_left, params['lin_l_w'], params['lin_l_b'])
    v_r = linear(h_right, params['lin_r_w'], params['lin_r_b'])
    h_hat = weights[:, 0:1] * v_l + weights[:, 1:2] * v_r
    rep = linear(h_hat, params['lin_rep_w'], params['lin_rep_b'])
    return jax.nn.relu(rep) + h_hat


# --------------------------- main ---------------------------------------------

if __name__ == "__main__":
    B, D = 520, 128   # batch (non-multiple of the tile: exercises ragged grid), h_dim

    key = jax.random.PRNGKey(0)
    ks = jax.random.split(key, 12)
    scale = 0.1
    params = {
        'att_l_w': scale * jax.random.normal(ks[0], (1, D), jnp.float32),
        'att_l_b': scale * jax.random.normal(ks[1], (1,), jnp.float32),
        'att_r_w': scale * jax.random.normal(ks[2], (1, D), jnp.float32),
        'att_r_b': scale * jax.random.normal(ks[3], (1,), jnp.float32),
        'lin_l_w': scale * jax.random.normal(ks[4], (D, D), jnp.float32),
        'lin_l_b': scale * jax.random.normal(ks[5], (D,), jnp.float32),
        'lin_r_w': scale * jax.random.normal(ks[6], (D, D), jnp.float32),
        'lin_r_b': scale * jax.random.normal(ks[7], (D,), jnp.float32),
        'lin_rep_w': scale * jax.random.normal(ks[8], (D, D), jnp.float32),
        'lin_rep_b': scale * jax.random.normal(ks[9], (D,), jnp.float32),
    }
    h_left = jax.random.normal(ks[10], (B, D), jnp.float32)
    h_right = jax.random.normal(ks[11], (B, D), jnp.float32)

    # ---- f32 path (tight tolerance) ----
    prep_f32 = prepare_phrase_encoder_params(params, compute_dtype=jnp.float32)
    out_f32 = jax.block_until_ready(
        phrase_level_encoder_forward(h_left, h_right, prep_f32))
    ref_f32 = phrase_level_encoder_reference(h_left, h_right, params)
    assert out_f32.shape == ref_f32.shape == (B, D), (out_f32.shape, ref_f32.shape)
    if not jnp.allclose(out_f32, ref_f32, rtol=1e-4, atol=1e-4):
        err = float(jnp.max(jnp.abs(out_f32 - ref_f32)))
        raise AssertionError(f"f32 PhraseLevelEncoder mismatch, max abs err {err}")

    # ---- bf16 streaming path (halved HBM traffic; loose tolerance) ----
    hl_bf = h_left.astype(jnp.bfloat16)
    hr_bf = h_right.astype(jnp.bfloat16)
    prep_bf = prepare_phrase_encoder_params(params, compute_dtype=jnp.bfloat16)
    out_bf = jax.block_until_ready(
        phrase_level_encoder_forward(hl_bf, hr_bf, prep_bf))
    ref_bf = phrase_level_encoder_reference(
        hl_bf.astype(jnp.float32), hr_bf.astype(jnp.float32), params)
    assert out_bf.shape == (B, D) and out_bf.dtype == jnp.bfloat16
    if not jnp.allclose(out_bf.astype(jnp.float32), ref_bf, rtol=5e-2, atol=5e-2):
        err = float(jnp.max(jnp.abs(out_bf.astype(jnp.float32) - ref_bf)))
        raise AssertionError(f"bf16 PhraseLevelEncoder mismatch, max abs err {err}")

    print("KERNEL_OK")
</pallas_src>

<mosaic_0001>
module attributes {stable_mosaic.version = 11 : i64} {
  func.func @phrase_encoder_kernel(%arg0: i32, %arg1: memref<256x128xf32, #tpu.memory_space<vmem>>, %arg2: memref<256x128xf32, #tpu.memory_space<vmem>>, %arg3: memref<1x128xf32, #tpu.memory_space<vmem>>, %arg4: memref<1x128xf32, #tpu.memory_space<vmem>>, %arg5: memref<1x1xf32, #tpu.memory_space<smem>>, %arg6: memref<128x128xf32, #tpu.memory_space<vmem>>, %arg7: memref<1x128xf32, #tpu.memory_space<vmem>>, %arg8: memref<128x128xf32, #tpu.memory_space<vmem>>, %arg9: memref<1x128xf32, #tpu.memory_space<vmem>>, %arg10: memref<128x128xf32, #tpu.memory_space<vmem>>, %arg11: memref<1x128xf32, #tpu.memory_space<vmem>>, %arg12: memref<256x128xf32, #tpu.memory_space<vmem>>) attributes {dimension_semantics = [#tpu.dimension_semantics<parallel>], iteration_bounds = array<i64: 3>, scalar_prefetch = 0 : i64, scratch_operands = 0 : i64, tpu.core_type = #tpu.core_type<tc>, window_params = [{transform_indices = @transform_0, window_bounds = array<i64: 256, 128>}, {transform_indices = @transform_1, window_bounds = array<i64: 256, 128>}, {pipeline_mode = #tpu.pipeline_mode<synchronous>, transform_indices = @transform_2, window_bounds = array<i64: 1, 128>}, {pipeline_mode = #tpu.pipeline_mode<synchronous>, transform_indices = @transform_3, window_bounds = array<i64: 1, 128>}, {transform_indices = @transform_4, window_bounds = array<i64: 1, 1>}, {pipeline_mode = #tpu.pipeline_mode<synchronous>, transform_indices = @transform_5, window_bounds = array<i64: 128, 128>}, {pipeline_mode = #tpu.pipeline_mode<synchronous>, transform_indices = @transform_6, window_bounds = array<i64: 1, 128>}, {pipeline_mode = #tpu.pipeline_mode<synchronous>, transform_indices = @transform_7, window_bounds = array<i64: 128, 128>}, {pipeline_mode = #tpu.pipeline_mode<synchronous>, transform_indices = @transform_8, window_bounds = array<i64: 1, 128>}, {pipeline_mode = #tpu.pipeline_mode<synchronous>, transform_indices = @transform_9, window_bounds = array<i64: 128, 128>}, {pipeline_mode = #tpu.pipeline_mode<synchronous>, transform_indices = @transform_10, window_bounds = array<i64: 1, 128>}, {transform_indices = @transform_11, window_bounds = array<i64: 256, 128>}]} {
    %c0 = arith.constant 0 : index
    %c0_0 = arith.constant 0 : index
    %0 = vector.load %arg1[%c0, %c0_0] : memref<256x128xf32, #tpu.memory_space<vmem>>, vector<256x128xf32>
    %c0_1 = arith.constant 0 : index
    %c0_2 = arith.constant 0 : index
    %1 = vector.load %arg2[%c0_1, %c0_2] : memref<256x128xf32, #tpu.memory_space<vmem>>, vector<256x128xf32>
    %c0_3 = arith.constant 0 : index
    %c0_4 = arith.constant 0 : index
    %2 = vector.load %arg3[%c0_3, %c0_4] : memref<1x128xf32, #tpu.memory_space<vmem>>, vector<1x128xf32>
    %3 = vector.broadcast %2 : vector<1x128xf32> to vector<256x128xf32>
    %4 = arith.mulf %0, %3 : vector<256x128xf32>
    %cst = arith.constant dense<0.000000e+00> : vector<256xf32>
    %5 = vector.multi_reduction <add>, %4, %cst [1] : vector<256x128xf32> to vector<256xf32>
    %6 = vector.shape_cast %5 : vector<256xf32> to vector<256x1xf32>
    %c0_5 = arith.constant 0 : index
    %c0_6 = arith.constant 0 : index
    %7 = vector.load %arg4[%c0_5, %c0_6] : memref<1x128xf32, #tpu.memory_space<vmem>>, vector<1x128xf32>
    %8 = vector.broadcast %7 : vector<1x128xf32> to vector<256x128xf32>
    %9 = arith.mulf %1, %8 : vector<256x128xf32>
    %cst_7 = arith.constant dense<0.000000e+00> : vector<256xf32>
    %10 = vector.multi_reduction <add>, %9, %cst_7 [1] : vector<256x128xf32> to vector<256xf32>
    %11 = vector.shape_cast %10 : vector<256xf32> to vector<256x1xf32>
    %12 = arith.subf %6, %11 : vector<256x1xf32>
    %c0_8 = arith.constant 0 : index
    %c0_9 = arith.constant 0 : index
    %13 = memref.load %arg5[%c0_8, %c0_9] : memref<1x1xf32, #tpu.memory_space<smem>>
    %14 = vector.broadcast %13 : f32 to vector<256x1xf32>
    %15 = arith.addf %12, %14 : vector<256x1xf32>
    %16 = arith.negf %15 : vector<256x1xf32>
    %17 = math.exp %16 : vector<256x1xf32>
    %cst_10 = arith.constant 1.000000e+00 : f32
    %18 = vector.broadcast %cst_10 : f32 to vector<256x1xf32>
    %19 = arith.addf %18, %17 : vector<256x1xf32>
    %20 = arith.divf %18, %19 : vector<256x1xf32>
    %cst_11 = arith.constant 1.000000e+00 : f32
    %21 = vector.broadcast %cst_11 : f32 to vector<256x1xf32>
    %22 = arith.subf %21, %20 : vector<256x1xf32>
    %c0_12 = arith.constant 0 : index
    %c0_13 = arith.constant 0 : index
    %23 = vector.load %arg6[%c0_12, %c0_13] : memref<128x128xf32, #tpu.memory_space<vmem>>, vector<128x128xf32>
    %cst_14 = arith.constant dense<0.000000e+00> : vector<256x128xf32>
    %24 = tpu.matmul %0, %23, %cst_14 {dimension_numbers = #tpu.dot_dimension_numbers<[1], [0], [0], [1], [0, 0, 1, 1], [], []>} : vector<256x128xf32>, vector<128x128xf32>, vector<256x128xf32> -> vector<256x128xf32>
    %c0_15 = arith.constant 0 : index
    %c0_16 = arith.constant 0 : index
    %25 = vector.load %arg7[%c0_15, %c0_16] : memref<1x128xf32, #tpu.memory_space<vmem>>, vector<1x128xf32>
    %26 = vector.broadcast %25 : vector<1x128xf32> to vector<256x128xf32>
    %27 = arith.addf %24, %26 : vector<256x128xf32>
    %c0_17 = arith.constant 0 : index
    %c0_18 = arith.constant 0 : index
    %28 = vector.load %arg8[%c0_17, %c0_18] : memref<128x128xf32, #tpu.memory_space<vmem>>, vector<128x128xf32>
    %cst_19 = arith.constant dense<0.000000e+00> : vector<256x128xf32>
    %29 = tpu.matmul %1, %28, %cst_19 {dimension_numbers = #tpu.dot_dimension_numbers<[1], [0], [0], [1], [0, 0, 1, 1], [], []>} : vector<256x128xf32>, vector<128x128xf32>, vector<256x128xf32> -> vector<256x128xf32>
    %c0_20 = arith.constant 0 : index
    %c0_21 = arith.constant 0 : index
    %30 = vector.load %arg9[%c0_20, %c0_21] : memref<1x128xf32, #tpu.memory_space<vmem>>, vector<1x128xf32>
    %31 = vector.broadcast %30 : vector<1x128xf32> to vector<256x128xf32>
    %32 = arith.addf %29, %31 : vector<256x128xf32>
    %33 = vector.broadcast %20 : vector<256x1xf32> to vector<256x128xf32>
    %34 = arith.mulf %33, %27 : vector<256x128xf32>
    %35 = vector.broadcast %22 : vector<256x1xf32> to vector<256x128xf32>
    %36 = arith.mulf %35, %32 : vector<256x128xf32>
    %37 = arith.addf %34, %36 : vector<256x128xf32>
    %c0_22 = arith.constant 0 : index
    %c0_23 = arith.constant 0 : index
    %38 = vector.load %arg10[%c0_22, %c0_23] : memref<128x128xf32, #tpu.memory_space<vmem>>, vector<128x128xf32>
    %cst_24 = arith.constant dense<0.000000e+00> : vector<256x128xf32>
    %39 = tpu.matmul %37, %38, %cst_24 {dimension_numbers = #tpu.dot_dimension_numbers<[1], [0], [0], [1], [0, 0, 1, 1], [], []>} : vector<256x128xf32>, vector<128x128xf32>, vector<256x128xf32> -> vector<256x128xf32>
    %c0_25 = arith.constant 0 : index
    %c0_26 = arith.constant 0 : index
    %40 = vector.load %arg11[%c0_25, %c0_26] : memref<1x128xf32, #tpu.memory_space<vmem>>, vector<1x128xf32>
    %41 = vector.broadcast %40 : vector<1x128xf32> to vector<256x128xf32>
    %42 = arith.addf %39, %41 : vector<256x128xf32>
    %cst_27 = arith.constant 0.000000e+00 : f32
    %43 = vector.broadcast %cst_27 : f32 to vector<256x128xf32>
    %44 = arith.maximumf %42, %43 : vector<256x128xf32>
    %45 = arith.addf %44, %37 : vector<256x128xf32>
    %c0_28 = arith.constant 0 : index
    %c0_29 = arith.constant 0 : index
    %46 = vector.load %arg12[%c0_28, %c0_29] : memref<256x128xf32, #tpu.memory_space<vmem>>, vector<256x128xf32>
    tpu.vector_store %arg12[%c0_28, %c0_29], %45 {strides = array<i32>} : memref<256x128xf32, #tpu.memory_space<vmem>>, vector<256x128xf32>,
    return
  }
  func.func @transform_0(%arg0: i32) -> (i32, i32) {
    %c0_i32 = arith.constant 0 : i32
    %c0_i32_0 = arith.constant 0 : i32
    return %arg0, %c0_i32 : i32, i32
  }
  func.func @transform_1(%arg0: i32) -> (i32, i32) {
    %c0_i32 = arith.constant 0 : i32
    %c0_i32_0 = arith.constant 0 : i32
    return %arg0, %c0_i32 : i32, i32
  }
  func.func @transform_2(%arg0: i32) -> (i32, i32) {
    %c0_i32 = arith.constant 0 : i32
    %c0_i32_0 = arith.constant 0 : i32
    %c0_i32_1 = arith.constant 0 : i32
    return %c0_i32, %c0_i32_0 : i32, i32
  }
  func.func @transform_3(%arg0: i32) -> (i32, i32) {
    %c0_i32 = arith.constant 0 : i32
    %c0_i32_0 = arith.constant 0 : i32
    %c0_i32_1 = arith.constant 0 : i32
    return %c0_i32, %c0_i32_0 : i32, i32
  }
  func.func @transform_4(%arg0: i32) -> (i32, i32) {
    %c0_i32 = arith.constant 0 : i32
    %c0_i32_0 = arith.constant 0 : i32
    %c0_i32_1 = arith.constant 0 : i32
    return %c0_i32, %c0_i32_0 : i32, i32
  }
  func.func @transform_5(%arg0: i32) -> (i32, i32) {
    %c0_i32 = arith.constant 0 : i32
    %c0_i32_0 = arith.constant 0 : i32
    %c0_i32_1 = arith.constant 0 : i32
    return %c0_i32, %c0_i32_0 : i32, i32
  }
  func.func @transform_6(%arg0: i32) -> (i32, i32) {
    %c0_i32 = arith.constant 0 : i32
    %c0_i32_0 = arith.constant 0 : i32
    %c0_i32_1 = arith.constant 0 : i32
    return %c0_i32, %c0_i32_0 : i32, i32
  }
  func.func @transform_7(%arg0: i32) -> (i32, i32) {
    %c0_i32 = arith.constant 0 : i32
    %c0_i32_0 = arith.constant 0 : i32
    %c0_i32_1 = arith.constant 0 : i32
    return %c0_i32, %c0_i32_0 : i32, i32
  }
  func.func @transform_8(%arg0: i32) -> (i32, i32) {
    %c0_i32 = arith.constant 0 : i32
    %c0_i32_0 = arith.constant 0 : i32
    %c0_i32_1 = arith.constant 0 : i32
    return %c0_i32, %c0_i32_0 : i32, i32
  }
  func.func @transform_9(%arg0: i32) -> (i32, i32) {
    %c0_i32 = arith.constant 0 : i32
    %c0_i32_0 = arith.constant 0 : i32
    %c0_i32_1 = arith.constant 0 : i32
    return %c0_i32, %c0_i32_0 : i32, i32
  }
  func.func @transform_10(%arg0: i32) -> (i32, i32) {
    %c0_i32 = arith.constant 0 : i32
    %c0_i32_0 = arith.constant 0 : i32
    %c0_i32_1 = arith.constant 0 : i32
    return %c0_i32, %c0_i32_0 : i32, i32
  }
  func.func @transform_11(%arg0: i32) -> (i32, i32) {
    %c0_i32 = arith.constant 0 : i32
    %c0_i32_0 = arith.constant 0 : i32
    return %arg0, %c0_i32 : i32, i32
  }
}

</mosaic_0001>

<bundles_post_ra>
// kernel: phrase_level_encoder_forward.1
= control target key start
LH: loop header
LB: loop body
LE: loop exit
PB: predicated region body
PF: predicated region fallthrough
CT: control target
= control target key end

     0   :  { %s4359_s0 = inlined_call_operand.hbm [shape: f32[520,128], index: 0, kind: input, shape index: {}]   ;;  %s4360_s1 = inlined_call_operand.hbm [shape: f32[520,128], index: 1, kind: input, shape index: {}]   ;;  %s4361_s2 = inlined_call_operand.vmem [shape: f32[1,128], index: 2, kind: input, shape index: {}]   ;;  %s4362_s3 = inlined_call_operand.vmem [shape: f32[1,128], index: 3, kind: input, shape index: {}]   ;;  %s4363_s4 = inlined_call_operand.<no memory space> [shape: f32[1,1], index: 4, kind: input, shape index: {}]   ;;  %s4364_s5 = inlined_call_operand.hbm [shape: f32[128,128], index: 5, kind: input, shape index: {}]   ;;  %s4365_s6 = inlined_call_operand.vmem [shape: f32[1,128], index: 6, kind: input, shape index: {}]   ;;  %s4366_s7 = inlined_call_operand.hbm [shape: f32[128,128], index: 7, kind: input, shape index: {}]   ;;  %s4367_s8 = inlined_call_operand.vmem [shape: f32[1,128], index: 8, kind: input, shape index: {}]   ;;  %s4368_s9 = inlined_call_operand.hbm [shape: f32[128,128], index: 9, kind: input, shape index: {}]   ;;  %s4369_s10 = inlined_call_operand.vmem [shape: f32[1,128], index: 10, kind: input, shape index: {}]   ;;  %s4370_s11 = inlined_call_operand.hbm [shape: f32[520,128], index: 11, kind: output, shape index: {}]  }
   0x1   :  { %4376 = sst [smem:[#allocation28_spill]] %s4364_s5 }
   0x2   :  { %4377 = sst [smem:[#allocation29_spill]] %s4366_s7 }
   0x3   :  { %4378 = sst [smem:[#allocation30_spill]] %s4368_s9 }
   0x4   :  { %16 = sst [smem:[#allocation2]] %s4363_s4 }
   0x5   :  { %17 = vsyncpa [#allocation4], 0 }
   0x6   :  { %19 = vsyncpa [#allocation4 + $0x1], 0 }
   0x7   :  { %20 = vsyncpa [#allocation7], 0 }
   0x8   :  { %22 = vsyncpa [#allocation7 + $0x1], 0 }
   0x9   :  { %23 = vsyncpa [#allocation10], 0 }
   0xa   :  { %24 = vsyncpa [#allocation5], 0 }
   0xb   :  { %26 = vsyncpa [#allocation5 + $0x1], 0  ;;  %s3140_s19 = smov 0   ;;  %s3142_s20 = smov 0  }
   0xc   :  { %s3144_s21 = smov 0   ;;  %s3146_s22 = smov 0  }
   0xd LB: > { %s3161_s4 = sadd.s32 4294967295, %s3061_s22   ;;  %s2156_s23 = sadd.s32 4294967294, %s3061_s22   ;;  %s3061_s22 = sphi %s3146_s22, %s4426_s22   ;;  %s3057_s21 = sphi %s3144_s21, %s4430_s21   ;;  %s3053_s20 = sphi %s3142_s20, %s4429_s20   ;;  %s3049_s19 = sphi %s3140_s19, %s4428_s19  }
   0xe   : > { %s3165_s24 = sadd.s32 1, %s3061_s22   ;;  %s39_s25 = sadd.s32 1, %s3057_s21 }
   0xf   : > { %4379 = sst [smem:[#allocation18_spill]] %s3165_s24  ;;  %s36_s26 = ssub.s32 %s3061_s22, %s3165_s24 }
  0x10   : > { %p46_p0 = scmp.ne.s32.totalorder %s3057_s21, %s3053_s20  ;;  %p37_p1 = scmp.eq.s32.totalorder %s36_s26, 0 }
  0x11   : > { %p47_p2 = scmp.eq.s32.totalorder %s3061_s22, 0  ;;  %p52_p3 = scmp.ne.s32.totalorder %s3053_s20, %s3049_s19 }
  0x12   : > { %p4371_p4 = scmp.eq.s32.totalorder %s3161_s4, 0  ;;  %p291_p7 = scmp.eq.s32.totalorder %s3161_s4, 2 }
  0x13   : > { %s3177_s27 = scalar_select %p37_p1, %s3057_s21, %s39_s25  }
  0x14   : > { %p3179_p5 = por %p47_p2, %p46_p0  ;;  %p3185_p6 = por %p4371_p4, %p52_p3 }
  0x15   : > { %4380 = sst [smem:[#allocation19_spill]] %s3177_s27  ;;  %p297_p8 = scmp.eq.s32.totalorder %s2156_s23, 2 }
  0x16   : > { %s4382_s29 = scalar_select %p3185_p6, 1, 0 }
  0x17   : > { %p2157_p9 = scmp.ge.s32.totalorder %s3061_s22, 1  ;;  %p304_p10 = scmp.lt.s32.totalorder %s3061_s22, 4 }
  0x18   : > { %p3192_p11 = por %p291_p7, %p46_p0  ;;  %p3196_p12 = por %p297_p8, %p52_p3 }
  0x19   : > { %p3200_p13 = pnand %p2157_p9, %p304_p10  ;;  %s3063_s14 = smov [#allocation9]  }
  0x1a   : > { %s4383_s30 = scalar_select %p3192_p11, 1, 0 }
  0x1b   : > { %s4384_s12 = scalar_select %p3196_p12, 1, 0 }
  0x1c   : > { %p2663_p1 = pneg %p3200_p13  ;;  %s341_s15 = sshll.u32 %s3063_s14, 4  ;;  %s342_s15 = int_to_ptr.vmem [resolvable:$true] %s341_s15 }
  0x1d   : > { %4385 = sst [smem:[#allocation20_spill]] %s4384_s12  ;;  %s3064_s17 = smov [#allocation8]  }
  0x1e   : > { %p3208_p2 = pnand %p2663_p1, %p4371_p4  ;;  %s325_s18 = sshll.u32 %s3064_s17, 4  ;;  %s326_s18 = int_to_ptr.vmem [resolvable:$true] %s325_s18 }
  0x1f   : > { %s2866_s23 = scalar_lea.vmem %s342_s15, 2048  ;;  %p2874_p9 = scmp.lt.s32.totalorder %s342_s15, %s342_s15 }
  0x20   : > { %p2857_p0 = pneg %p3208_p2  ;;  %p2867_p3 = scmp.ne.s32.totalorder %s342_s15, %s2866_s23 }
  0x21   : > { %p2875_p10 = scmp.lt.s32.totalorder %s2866_s23, %s2866_s23 }
  0x22   : > { %p2869_p7 = pnand %p2867_p3, %p2857_p0 }
  0x23   : > { %p2876_p1 = por %p2875_p10, %p2874_p9 }
  0x24   : > { %p2870_p8 = pneg %p2869_p7 }
  0x26   : > { %p2877_p4 = pnand %p2876_p1, %p2870_p8 }
  0x28   : > { %2880 = shalt.err (!%p2877_p4)
}
  0x29   : > { %s3065_s25 = smov 128   ;;  %s3066_s26 = smov 8  }
  0x2a   : > { %s4388_s7 = sld [smem:[#allocation29_spill]]  ;;  %s2892_s27 = scalar_lea.vmem %s326_s18, 2048 }
  0x2b   : > { %p2893_p12 = scmp.ne.s32.totalorder %s326_s18, %s2892_s27  ;;  %p2900_p11 = scmp.lt.s32.totalorder %s326_s18, %s326_s18 }
  0x2c   : > { %p2901_p6 = scmp.lt.s32.totalorder %s2892_s27, %s2892_s27 }
  0x2d   : > { %p2895_p3 = pnand %p2893_p12, %p2857_p0 }
  0x2e   : > { %p2902_p9 = por %p2901_p6, %p2900_p11 }
  0x2f   : > { %p2896_p7 = pneg %p2895_p3 }
  0x30   : > { %2669 = dma.hbm_to_vmem [thread:$0]  (!%p3208_p2), %s4388_s7, 2048, %s342_s15, [#allocation10], %s3065_s25, %s3065_s25, %s3066_s26  }
  0x31   : > { %p2903_p8 = pnand %p2902_p9, %p2896_p7 }
  0x33   : > { %2906 = shalt.err (!%p2903_p8)
}
  0x34   : > { %s4389_s5 = sld [smem:[#allocation28_spill]]  ;;  %s3067_s14 = smov [#allocation11]  }
  0x35   : > { %s357_s15 = sshll.u32 %s3067_s14, 4  ;;  %s358_s15 = int_to_ptr.vmem [resolvable:$true] %s357_s15 }
  0x36   : > { %s2918_s17 = scalar_lea.vmem %s358_s15, 2048  ;;  %p2926_p1 = scmp.lt.s32.totalorder %s358_s15, %s358_s15 }
  0x37   : > { %p2919_p4 = scmp.ne.s32.totalorder %s358_s15, %s2918_s17  ;;  %p2927_p6 = scmp.lt.s32.totalorder %s2918_s17, %s2918_s17 }
  0x39   : > { %p2921_p12 = pnand %p2919_p4, %p2857_p0  ;;  %p2928_p11 = por %p2927_p6, %p2926_p1 }
  0x3a   : > { %2666 = dma.hbm_to_vmem [thread:$0]  (!%p3208_p2), %s4389_s5, 2048, %s326_s18, [#allocation7], %s3065_s25, %s3065_s25, %s3066_s26  }
  0x3b   : > { %p2922_p10 = pneg %p2921_p12 }
  0x3d   : > { %p2929_p3 = pnand %p2928_p11, %p2922_p10 }
  0x3f   : > { %2932 = shalt.err (!%p2929_p3)
}
  0x40   : > { %s4390_s9 = sld [smem:[#allocation30_spill]]  ;;  %p2161_p7 = scmp.ge.s32.totalorder %s3061_s22, 3 }
  0x42   : > { %370 = sbr.rel (%p2161_p7) target bundleno = 135 (0x87), region = 52 }
  0x46   : > { %2672 = dma.hbm_to_vmem [thread:$0]  (!%p3208_p2), %s4390_s9, 2048, %s358_s15, [#allocation10], %s3065_s25, %s3065_s25, %s3066_s26  }
  0x47   : > { %373 = sbr.rel (!%p3179_p5) target bundleno = 103 (0x67), region = 56  ;;  %s374_s18 = sand.u32 (%p3179_p5), 1, %s3057_s21  }
  0x48   : > { %s2163_s23 = sshll.u32 (%p3179_p5), %s3061_s22, 5  ;;  %s2162_s14 = sshll.u32 (%p3179_p5), %s374_s18, 8 }
  0x49   : > { %s380_s17 = ssub.s32 (%p3179_p5), 65, %s2163_s23  ;;  %s3246_s27 = scalar_lea.sflag (%p3179_p5), [#allocation4], %s374_s18 }
  0x4a   : > { %p381_p0 = scmp.lt.s32.totalorder (%p3179_p5), %s380_s17, 32  ;;  %s378_s25 = scalar_lea.vmem (%p3179_p5), [#allocation3], %s2162_s14 }
  0x4c   : > { %s4432_s17 = smov (!%p381_p0, %s380_s17), 32 }
  0x4d   : > { %s3243_s5 = sshll.u32 %s4432_s17, 7 }
  0x4e   : > { %s385_s16 = ssub.s32 4096, %s3243_s5 }
  0x4f   : > { %386 = vsyncadd %s3246_s27, %s385_s16  ;;  %p2165_p2 = scmp.ne.s32.totalorder %s3243_s5, 0  ;;  %s2229_s26 = sshll.u32 %s3061_s22, 12 }
  0x50   : > { %s3254_s23 = scalar_lea.hbm %s4359_s0, %s2229_s26  ;;  %s391_s17 = sshll.u32 %s378_s25, 4  ;;  %s3256_s17 = int_to_ptr.vmem [resolvable:$true] %s391_s17 }
  0x51   : > { %s2933_s18 = scalar_lea.hbm %s3254_s23, %s3243_s5  ;;  %s2937_s7 = scalar_lea.hbm %s4359_s0, 8320 }
  0x52   : > { %p2934_p9 = scmp.ne.s32.totalorder %s3254_s23, %s2933_s18  ;;  %p2938_p12 = scmp.lt.s32.totalorder %s3254_s23, %s4359_s0 }
  0x53   : > { %p2939_p10 = scmp.lt.s32.totalorder %s2937_s7, %s2933_s18 }
  0x54   : > { %p2935_p8 = pnand %p2934_p9, %p2165_p2 }
  0x55   : > { %p2940_p1 = por %p2939_p10, %p2938_p12 }
  0x56   : > { %p2936_p4 = pneg %p2935_p8 }
  0x58   : > { %p2941_p6 = pnand %p2940_p1, %p2936_p4 }
  0x5a   : > { %2944 = shalt.err (!%p2941_p6)
}
  0x5b   : > { %s2945_s25 = scalar_lea.vmem %s3256_s17, %s3243_s5  ;;  %s3068_s26 = smov [#allocation3]  }
  0x5c   : > { %p2946_p11 = scmp.ne.s32.totalorder %s3256_s17, %s2945_s25  ;;  %s2949_s15 = sshll.u32 %s3068_s26, 4  ;;  %s2950_s15 = int_to_ptr.vmem [resolvable:$false] %s2949_s15 }
  0x5d   : > { %s2951_s24 = scalar_lea.vmem %s2950_s15, 8192  ;;  %p2952_p0 = scmp.lt.s32.totalorder %s3256_s17, %s2950_s15 }
  0x5e   : > { %p2947_p3 = pnand %p2946_p11, %p2165_p2  ;;  %p2953_p9 = scmp.lt.s32.totalorder %s2951_s24, %s2945_s25 }
  0x60   : > { %p2948_p7 = pneg %p2947_p3  ;;  %p2954_p8 = por %p2953_p9, %p2952_p0 }
  0x62   : > { %p2955_p12 = pnand %p2954_p8, %p2948_p7 }
  0x64   : > { %2958 = shalt.err (!%p2955_p12)
}
  0x65   : > { %s3069_s7 = smov 128   ;;  %s3070_s9 = smov 8  }
  0x66   : > { %397 = dma.hbm_to_vmem [thread:$0]  (%p2165_p2), %s3254_s23, %s3243_s5, %s3256_s17, %s3246_s27, %s3069_s7, %s3069_s7, %s3070_s9  }
  0x67 PF: > { %400 = sbr.rel (!%p3179_p5) target bundleno = 135 (0x87), region = 60  ;;  %s401_s12 = sand.u32 (%p3179_p5), 1, %s3061_s22  }
  0x68   : > { %s403_s18 = sand.u32 (%p3179_p5), 1, %s3057_s21   ;;  %s2170_s16 = sshll.u32 (%p3179_p5), %s3061_s22, 5 }
  0x69   : > { %s2169_s14 = sshll.u32 (%p3179_p5), %s403_s18, 8  ;;  %s407_s25 = ssub.s32 (%p3179_p5), 65, %s2170_s16 }
  0x6a   : > { %p408_p4 = scmp.lt.s32.totalorder (%p3179_p5), %s407_s25, 32  ;;  %s3290_s24 = scalar_lea.sflag (%p3179_p5), [#allocation7], %s401_s12 }
  0x6b   : > { %s405_s5 = scalar_lea.vmem (%p3179_p5), [#allocation6], %s2169_s14 }
  0x6c   : > { %s4434_s25 = smov (!%p408_p4, %s407_s25), 32 }
  0x6d   : > { %s3287_s26 = sshll.u32 %s4434_s25, 7 }
  0x6e   : > { %s412_s15 = ssub.s32 4096, %s3287_s26 }
  0x6f   : > { %413 = vsyncadd %s3290_s24, %s412_s15  ;;  %p2172_p5 = scmp.ne.s32.totalorder %s3287_s26, 0  ;;  %s2230_s28 = sshll.u32 %s3061_s22, 12 }
  0x70   : > { %s3298_s17 = scalar_lea.hbm %s4360_s1, %s2230_s28  ;;  %s418_s7 = sshll.u32 %s405_s5, 4  ;;  %s3300_s7 = int_to_ptr.vmem [resolvable:$true] %s418_s7 }
  0x71   : > { %s2959_s9 = scalar_lea.hbm %s3298_s17, %s3287_s26  ;;  %s2963_s14 = scalar_lea.hbm %s4360_s1, 8320 }
  0x72   : > { %p2960_p2 = scmp.ne.s32.totalorder %s3298_s17, %s2959_s9  ;;  %p2964_p6 = scmp.lt.s32.totalorder %s3298_s17, %s4360_s1 }
  0x73   : > { %p2965_p11 = scmp.lt.s32.totalorder %s2963_s14, %s2959_s9 }
  0x74   : > { %p2961_p10 = pnand %p2960_p2, %p2172_p5 }
  0x75   : > { %p2966_p3 = por %p2965_p11, %p2964_p6 }
  0x76   : > { %p2962_p1 = pneg %p2961_p10 }
  0x78   : > { %p2967_p7 = pnand %p2966_p3, %p2962_p1 }
  0x7a   : > { %2970 = shalt.err (!%p2967_p7)
}
  0x7b   : > { %s2971_s15 = scalar_lea.vmem %s3300_s7, %s3287_s26  ;;  %s3071_s5 = smov [#allocation6]  }
  0x7c   : > { %p2972_p0 = scmp.ne.s32.totalorder %s3300_s7, %s2971_s15  ;;  %s2975_s28 = sshll.u32 %s3071_s5, 4  ;;  %s2976_s28 = int_to_ptr.vmem [resolvable:$false] %s2975_s28 }
  0x7d   : > { %s2977_s27 = scalar_lea.vmem %s2976_s28, 8192  ;;  %p2978_p12 = scmp.lt.s32.totalorder %s3300_s7, %s2976_s28 }
  0x7e   : > { %p2973_p9 = pnand %p2972_p0, %p2172_p5  ;;  %p2979_p4 = scmp.lt.s32.totalorder %s2977_s27, %s2971_s15 }
  0x80   : > { %p2974_p8 = pneg %p2973_p9  ;;  %p2980_p2 = por %p2979_p4, %p2978_p12 }
  0x82   : > { %p2981_p10 = pnand %p2980_p2, %p2974_p8 }
  0x84   : > { %2984 = shalt.err (!%p2981_p10)
}
  0x85   : > { %s3072_s23 = smov 128   ;;  %s3073_s9 = smov 8  }
  0x86   : > { %424 = dma.hbm_to_vmem [thread:$0]  (%p2172_p5), %s3298_s17, %s3287_s26, %s3300_s7, %s3290_s24, %s3072_s23, %s3072_s23, %s3073_s9  }
  0x87 PF: > { %430 = sbr.rel (%p3200_p13) target bundleno = 727 (0x2d7), region = 64 }
  0x8c   : > { %s3329_s12 = sand.u32 1, %s3053_s20   ;;  %p4391_p1 = scmp.ne.s32.totalorder %s4382_s29, 0 }
  0x8d   : > { %s3332_s18 = sshll.u32 %s3329_s12, 8  ;;  %s433_s14 = scalar_lea.sflag [#allocation4], %s3329_s12 }
  0x8e   : > { %s3336_s16 = scalar_lea.vmem [#allocation3], %s3332_s18 }
  0x8f   : > { %3028 = dma.done.wait (%p4391_p1), %s433_s14, 4096  }
  0x90   : > { %3030 = vsyncadd (%p4391_p1), %s433_s14, 4294963200  ;;  %s441_s13 = sand.u32 1, %s3161_s4   ;;  %s3344_s24 = scalar_lea.vmem [#allocation6], %s3332_s18 }
  0x91   : > { %s442_s26 = scalar_lea.sflag [#allocation7], %s441_s13 }
  0x92   : > { %3032 = dma.done.wait (%p4391_p1), %s442_s26, 4096  }
  0x93   : > { %3034 = vsyncadd (%p4391_p1), %s442_s26, 4294963200  ;;  %p4392_p13 = scmp.eq.s32.totalorder %s3161_s4, 0 }
  0x95   : > { %3036 = dma.done.wait (%p4392_p13), [#allocation7], 2048   ;;  %p4393_p5 = pmov %p4392_p13 }
  0x97   : > { %3038 = vsyncadd (%p4393_p5), [#allocation7], 4294965248  ;;  %p4394_p6 = pmov %p4393_p5 }
  0x98   : > { %p4395_p11 = pmov %p4393_p5 }
  0x99   : > { %3040 = dma.done.wait (%p4394_p6), [#allocation10], 4096  }
  0x9a   : > { %3042 = vsyncadd (%p4395_p11), [#allocation10], 4294963200  ;;  %v1091_v0 = vld [vmem:[#allocation8 + $0x78] sm:$0xff]  ;;  %v1090_v1 = vld [vmem:[#allocation8 + $0x70] sm:$0xff]  ;;  %s818_s15 = sld [smem:[#allocation2]]  ;;  %p4423_p3 = scmp.ne.s32.totalorder %s4383_s30, 0 }
  0x9b   : > { %v3359_v2 = vld [vmem:[%s3336_s16 + $0x8] sm:$0xff]  ;;  %2376 = vmatprep.subr.mxu0 %v1091_v0  ;;  %2616 = vmatprep.subr.mxu1 %v1091_v0  ;;  %v3364_v3 = vld [vmem:[%s4361_s2] ss:$0 sm:$0xff]  ;;  %v3389_v14 = vld [vmem:[%s3344_s24 + $0x10] sm:$0xff]  ;;  %s2221_s13 = sshll.u32 (%p4423_p3), %s3161_s4, 5 }
  0x9c   : > { %v3367_v4 = vld [vmem:[%s3336_s16] sm:$0xff]  ;;  %2377 = vmatpush3.msra.mxu0 %v1091_v0  ;;  %2632 = vmatpush3.msra.mxu1 %v1091_v0  ;;  %v588_v5 = vmul.f32 %v3364_v3, %v3359_v2  ;;  %v3374_v7 = vld [vmem:[%s3344_s24 + $0x8] sm:$0xff]  ;;  %v3392_v15 = vld [vmem:[%s3336_s16 + $0x10] sm:$0xff]  ;;  %s2021_s26 = ssub.s32 (%p4423_p3), 65, %s2221_s13 }
  0x9d   : > { %v587_v6 = vmul.f32 %v3364_v3, %v3367_v4  ;;  %v3379_v8 = vld [vmem:[%s4362_s3] ss:$0 sm:$0xff]  ;;  %2378 = vmatprep.subr.mxu0 %v1090_v1  ;;  %2617 = vmatprep.subr.mxu1 %v1090_v1  ;;  %v1089_v9 = vld [vmem:[#allocation8 + $0x68] sm:$0xff]  ;;  %v1087_v16 = vld [vmem:[#allocation8 + $0x58] sm:$0xff]  ;;  %v589_v19 = vmul.f32 %v3364_v3, %v3392_v15  ;;  %p2022_p7 = scmp.lt.s32.totalorder (%p4423_p3), %s2021_s26, 32 }
  0x9e   : > { %v3382_v10 = vld [vmem:[%s3344_s24] sm:$0xff]  ;;  %621 = vadd.xlane.f32.xlu1 %v588_v5  ;;  %2379 = vmatpush3.msra.mxu0 %v1090_v1  ;;  %v691_v12 = vmul.f32 %v3379_v8, %v3374_v7  ;;  %v1086_v17 = vld [vmem:[#allocation8 + $0x50] sm:$0xff]  ;;  %v692_v18 = vmul.f32 %v3379_v8, %v3389_v14  ;;  %v3399_v20 = vld [vmem:[%s3344_s24 + $0x18] sm:$0xff] }
  0x9f   : > { %619 = vadd.xlane.f32.xlu0 %v587_v6  ;;  %2633 = vmatpush3.msra.mxu1 %v1090_v1  ;;  %v1088_v11 = vld [vmem:[#allocation8 + $0x60] sm:$0xff]  ;;  %v690_v13 = vmul.f32 %v3379_v8, %v3382_v10  ;;  %v3402_v21 = vld [vmem:[%s3336_s16 + $0x18] sm:$0xff]  ;;  %v1085_v22 = vld [vmem:[#allocation8 + $0x48] sm:$0xff]  ;;  %v693_v24 = vmul.f32 %v3379_v8, %v3399_v20 }
  0xa0   : > { %2380 = vmatprep.subr.mxu0 %v1089_v9  ;;  %2618 = vmatprep.subr.mxu1 %v1089_v9  ;;  %v1084_v23 = vld [vmem:[#allocation8 + $0x40] sm:$0xff]  ;;  %v590_v25 = vmul.f32 %v3364_v3, %v3402_v21  ;;  %v1083_v28 = vld [vmem:[#allocation8 + $0x38] sm:$0xff]  ;;  %v1082_v29 = vld [vmem:[#allocation8 + $0x30] sm:$0xff] }
  0xa1   : > { %2381 = vmatpush3.msra.mxu0 %v1089_v9  ;;  %2634 = vmatpush3.msra.mxu1 %v1089_v9  ;;  %v3409_v26 = vld [vmem:[%s3344_s24 + $0x20] sm:$0xff]  ;;  %v3419_v32 = vld [vmem:[%s3344_s24 + $0x28] sm:$0xff]  ;;  %v3429_v38 = vld [vmem:[%s3336_s16 + $0xf8] sm:$0xff] }
  0xa2   : > { %2382 = vmatprep.subr.mxu0 %v1088_v11  ;;  %2619 = vmatprep.subr.mxu1 %v1088_v11  ;;  %v3412_v27 = vld [vmem:[%s3336_s16 + $0x20] sm:$0xff]  ;;  %v694_v30 = vmul.f32 %v3379_v8, %v3409_v26  ;;  %v3422_v33 = vld [vmem:[%s3336_s16 + $0x28] sm:$0xff]  ;;  %v695_v36 = vmul.f32 %v3379_v8, %v3419_v32  ;;  %v3432_v39 = vld [vmem:[%s3344_s24 + $0x30] sm:$0xff]  ;;  %v3439_v41 = vmul.f32 %v3364_v3, %v3429_v38 }
  0xa3   : > { %724 = vadd.xlane.f32.xlu1 %v691_v12  ;;  %722 = vadd.xlane.f32.xlu0 %v690_v13  ;;  %v591_v31 = vmul.f32 %v3364_v3, %v3412_v27  ;;  %v1081_v34 = vld [vmem:[#allocation8 + $0x28] sm:$0xff]  ;;  %v1080_v35 = vld [vmem:[#allocation8 + $0x20] sm:$0xff]  ;;  %v592_v37 = vmul.f32 %v3364_v3, %v3422_v33  ;;  %v3435_v40 = vld [vmem:[%s3336_s16 + $0x30] sm:$0xff]  ;;  %v696_v44 = vmul.f32 %v3379_v8, %v3432_v39 }
  0xa4   : > { %2383 = vmatpush3.msra.mxu0 %v1088_v11  ;;  %2635 = vmatpush3.msra.mxu1 %v1088_v11  ;;  %v1079_v42 = vld [vmem:[#allocation8 + $0x18] sm:$0xff]  ;;  %v1078_v43 = vld [vmem:[#allocation8 + $0x10] sm:$0xff]  ;;  %v593_v45 = vmul.f32 %v3364_v3, %v3435_v40  ;;  %v1077_v48 = vld [vmem:[#allocation8 + $0x8] sm:$0xff] }
  0xa5   : > { %2384 = vmatprep.subr.mxu0 %v1087_v16  ;;  %2620 = vmatprep.subr.mxu1 %v1087_v16  ;;  %v3446_v46 = vld [vmem:[%s3344_s24 + $0x38] sm:$0xff]  ;;  %v1076_v49 = vld [vmem:[#allocation8] sm:$0xff]  ;;  %v3465_v55 = vld [vmem:[%s3336_s16 + $0x88] sm:$0xff] }
  0xa6   : > { %2385 = vmatpush3.msra.mxu0 %v1087_v16  ;;  %2636 = vmatpush3.msra.mxu1 %v1087_v16  ;;  %v3449_v47 = vld [vmem:[%s3336_s16 + $0x38] sm:$0xff]  ;;  %v697_v50 = vmul.f32 %v3379_v8, %v3446_v46  ;;  %v3456_v52 = vld [vmem:[%s3344_s24 + $0x40] sm:$0xff]  ;;  %v3474_v59 = vld [vmem:[%s3344_s24 + $0x48] sm:$0xff] }
  0xa7   : > { %2386 = vmatprep.subr.mxu0 %v1086_v17  ;;  %2621 = vmatprep.subr.mxu1 %v1086_v17  ;;  %v594_v51 = vmul.f32 %v3364_v3, %v3449_v47  ;;  %v3459_v53 = vld [vmem:[%s3336_s16 + $0x40] sm:$0xff]  ;;  %v698_v56 = vmul.f32 %v3379_v8, %v3456_v52  ;;  %v1339_v57 = vld [vmem:[#allocation9 + $0x78] sm:$0xff]  ;;  %v1338_v60 = vld [vmem:[#allocation9 + $0x70] sm:$0xff]  ;;  %v699_v0 = vmul.f32 %v3379_v8, %v3474_v59 }
  0xa8   : > { %726 = vadd.xlane.f32.xlu1 %v692_v18  ;;  %623 = vadd.xlane.f32.xlu0 %v589_v19  ;;  %v3462_v54 = vld [vmem:[%s3336_s16 + $0x80] sm:$0xff]  ;;  %v595_v58 = vmul.f32 %v3364_v3, %v3459_v53  ;;  %v3479_v61 = vld [vmem:[%s3336_s16 + $0x48] sm:$0xff]  ;;  %v3482_v62 = vld [vmem:[%s3336_s16 + $0x90] sm:$0xff] }
  0xa9   : > { %2387 = vmatpush3.msra.mxu0 %v1086_v17  ;;  %2637 = vmatpush3.msra.mxu1 %v1086_v17  ;;  %v3485_v63 = vld [vmem:[%s3336_s16 + $0x98] sm:$0xff]  ;;  %v1337_v1 = vld [vmem:[#allocation9 + $0x68] sm:$0xff]  ;;  %v1336_v5 = vld [vmem:[#allocation9 + $0x60] sm:$0xff] }
  0xaa   : > { %2388 = vmatprep.subr.mxu0 %v1085_v22  ;;  %2622 = vmatprep.subr.mxu1 %v1085_v22  ;;  %v526_v6 = vld [vmem:[%s3336_s16 + $0x50] sm:$0xff]  ;;  %v3500_v9 = vld [vmem:[%s3336_s16 + $0xa0] sm:$0xff]  ;;  %v3503_v11 = vld [vmem:[%s3336_s16 + $0xa8] sm:$0xff] }
  0xab   : > { %2389 = vmatpush3.msra.mxu0 %v1085_v22  ;;  %2638 = vmatpush3.msra.mxu1 %v1085_v22  ;;  %v1335_v13 = vld [vmem:[#allocation9 + $0x58] sm:$0xff]  ;;  %v1334_v17 = vld [vmem:[#allocation9 + $0x50] sm:$0xff] }
  0xac   : > { %2390 = vmatprep.subr.mxu0 %v1084_v23  ;;  %2623 = vmatprep.subr.mxu1 %v1084_v23  ;;  %v3511_v16 = vld [vmem:[%s3344_s24 + $0x58] sm:$0xff]  ;;  %v3517_v19 = vld [vmem:[%s3336_s16 + $0xb0] sm:$0xff] }
  0xad   : > { %728 = vadd.xlane.f32.xlu1 %v693_v24  ;;  %625 = vadd.xlane.f32.xlu0 %v590_v25  ;;  %v527_v18 = vld [vmem:[%s3336_s16 + $0x58] sm:$0xff]  ;;  %v701_v22 = vmul.f32 %v3379_v8, %v3511_v16  ;;  %v3528_v25 = vld [vmem:[%s3344_s24 + $0x60] sm:$0xff] }
  0xae   : > { %2391 = vmatpush3.msra.mxu0 %v1084_v23  ;;  %2639 = vmatpush3.msra.mxu1 %v1084_v23  ;;  %v1333_v23 = vld [vmem:[#allocation9 + $0x48] sm:$0xff]  ;;  %v598_v24 = vmul.f32 %v3364_v3, %v527_v18 }
  0xaf   : > { %2392 = vmatprep.subr.mxu0 %v1083_v28  ;;  %2624 = vmatprep.subr.mxu1 %v1083_v28 }
  0xb0   : > { %2393 = vmatpush3.msra.mxu0 %v1083_v28  ;;  %2640 = vmatpush3.msra.mxu1 %v1083_v28  ;;  %v528_v28 = vld [vmem:[%s3336_s16 + $0x60] sm:$0xff] }
  0xb1   : > { %2394 = vmatprep.subr.mxu0 %v1082_v29  ;;  %2625 = vmatprep.subr.mxu1 %v1082_v29 }
  0xb2   : > { %730 = vadd.xlane.f32.xlu1 %v694_v30  ;;  %627 = vadd.xlane.f32.xlu0 %v591_v31  ;;  %v3537_v30 = vld [vmem:[%s3336_s16 + $0xc8] sm:$0xff]  ;;  %v702_v31 = vmul.f32 %v3379_v8, %v3528_v25 }
  0xb3   : > { %2395 = vmatpush3.msra.mxu0 %v1082_v29  ;;  %2641 = vmatpush3.msra.mxu1 %v1082_v29  ;;  %v3534_v29 = vld [vmem:[%s3336_s16 + $0xc0] sm:$0xff] }
  0xb4   : > { %2396 = vmatprep.subr.mxu0 %v1081_v34  ;;  %2626 = vmatprep.subr.mxu1 %v1081_v34 }
  0xb5   : > { %2397 = vmatpush3.msra.mxu0 %v1081_v34  ;;  %2642 = vmatpush3.msra.mxu1 %v1081_v34  ;;  %v599_v34 = vmul.f32 %v3364_v3, %v528_v28 }
  0xb6   : > { %2398 = vmatprep.subr.mxu0 %v1080_v35  ;;  %2627 = vmatprep.subr.mxu1 %v1080_v35 }
  0xb7   : > { %732 = vadd.xlane.f32.xlu1 %v695_v36  ;;  %629 = vadd.xlane.f32.xlu0 %v592_v37  ;;  %v1330_v36 = vld [vmem:[#allocation9 + $0x30] sm:$0xff]  ;;  %v529_v37 = vld [vmem:[%s3336_s16 + $0x68] sm:$0xff] }
  0xb8   : > { %2399 = vmatpush3.msra.mxu0 %v1080_v35  ;;  %2643 = vmatpush3.msra.mxu1 %v1080_v35  ;;  %v3545_v35 = vld [vmem:[%s3344_s24 + $0x68] sm:$0xff] }
  0xb9   : > { %2400 = vmatprep.subr.mxu0 %v1079_v42  ;;  %2628 = vmatprep.subr.mxu1 %v1079_v42 }
  0xba   : > { %2401 = vmatpush3.msra.mxu0 %v1079_v42  ;;  %2644 = vmatpush3.msra.mxu1 %v1079_v42  ;;  %v3554_v42 = vld [vmem:[%s3336_s16 + $0xd8] sm:$0xff] }
  0xbb   : > { %2402 = vmatprep.subr.mxu0 %v1078_v43  ;;  %2629 = vmatprep.subr.mxu1 %v1078_v43 }
  0xbc   : > { %734 = vadd.xlane.f32.xlu1 %v696_v44  ;;  %631 = vadd.xlane.f32.xlu0 %v593_v45  ;;  %v1329_v44 = vld [vmem:[#allocation9 + $0x28] sm:$0xff]  ;;  %v600_v45 = vmul.f32 %v3364_v3, %v529_v37 }
  0xbd   : > { %2403 = vmatpush3.msra.mxu0 %v1078_v43  ;;  %2645 = vmatpush3.msra.mxu1 %v1078_v43  ;;  %v703_v43 = vmul.f32 %v3379_v8, %v3545_v35 }
  0xbe   : > { %2404 = vmatprep.subr.mxu0 %v1077_v48  ;;  %2630 = vmatprep.subr.mxu1 %v1077_v48 }
  0xbf   : > { %2405 = vmatpush3.msra.mxu0 %v1077_v48  ;;  %2646 = vmatpush3.msra.mxu1 %v1077_v48  ;;  %v1328_v48 = vld [vmem:[#allocation9 + $0x20] sm:$0xff] }
  0xc0   : > { %2406 = vmatprep.subr.mxu0 %v1076_v49  ;;  %2631 = vmatprep.subr.mxu1 %v1076_v49 }
  0xc1   : > { %736 = vadd.xlane.f32.xlu1 %v697_v50  ;;  %633 = vadd.xlane.f32.xlu0 %v594_v51  ;;  %v3566_v50 = vld [vmem:[%s3336_s16 + $0xe0] sm:$0xff]  ;;  %v3569_v51 = vld [vmem:[%s3336_s16 + $0xe8] sm:$0xff] }
  0xc2   : > { %2407 = vmatpush3.msra.mxu0 %v1076_v49  ;;  %2647 = vmatpush3.msra.mxu1 %v1076_v49  ;;  %v530_v49 = vld [vmem:[%s3336_s16 + $0x70] sm:$0xff] }
  0xc3   : > { %2408 = vmatprep.mubr.f32.mxu0 %v3367_v4  ;;  %2432 = vmatprep.mubr.f32.mxu1 %v3462_v54  ;;  %v3494_v4 = vld [vmem:[%s3344_s24 + $0x50] sm:$0xff] }
  0xc4   : > { %2409 = vmatmul.mubr.f32.vlgmr.msra.gmra.mxu0 %v3359_v2  ;;  %2433 = vmatmul.mubr.f32.vlgmr.msra.gmra.mxu1 %v3465_v55  ;;  %v596_v2 = vmul.f32 %v3364_v3, %v3479_v61  ;;  %v700_v12 = vmul.f32 %v3379_v8, %v3494_v4 }
  0xc5   : > { %2456 = vmatprep.subr.mxu1 %v1339_v57  ;;  %738 = vadd.xlane.f32.xlu1 %v698_v56  ;;  %v1327_v56 = vld [vmem:[#allocation9 + $0x18] sm:$0xff] }
  0xc6   : > { %2457 = vmatpush3.msra.mxu1 %v1339_v57  ;;  %635 = vadd.xlane.f32.xlu0 %v595_v58  ;;  %v601_v57 = vmul.f32 %v3364_v3, %v530_v49  ;;  %v3576_v58 = vld [vmem:[%s3344_s24 + $0x78] sm:$0xff] }
  0xc7   : > { %2458 = vmatprep.subr.mxu1 %v1338_v60  ;;  %2411 = vmatprep.mubr.f32.mxu0 %v3392_v15  ;;  %v597_v15 = vmul.f32 %v3364_v3, %v526_v6 }
  0xc8   : > { %2435 = vmatprep.mubr.f32.mxu1 %v3482_v62  ;;  %2459 = vmatpush3.msra.mxu1 %v1338_v60  ;;  %v1326_v60 = vld [vmem:[#allocation9 + $0x10] sm:$0xff] }
  0xc9   : > { %2412 = vmatmul.mubr.f32.gmra.mxu0 %v3402_v21  ;;  %2436 = vmatmul.mubr.f32.gmra.mxu1 %v3485_v63  ;;  %v3520_v21 = vld [vmem:[%s3336_s16 + $0xb8] sm:$0xff] }
  0xca   : > { %2460 = vmatprep.subr.mxu1 %v1337_v1  ;;  %740 = vadd.xlane.f32.xlu1 %v699_v0  ;;  %v3581_v0 = vld [vmem:[%s3336_s16 + $0xf0] sm:$0xff] }
  0xcb   : > { %2461 = vmatpush3.msra.mxu1 %v1337_v1  ;;  %637 = vadd.xlane.f32.xlu0 %v596_v2  ;;  %v705_v1 = vmul.f32 %v3379_v8, %v3576_v58  ;;  %v1325_v2 = vld [vmem:[#allocation9 + $0x8] sm:$0xff] }
  0xcc   : > { %2462 = vmatprep.subr.mxu1 %v1336_v5  ;;  %2414 = vmatprep.mubr.f32.mxu0 %v3412_v27  ;;  %v1332_v27 = vld [vmem:[#allocation9 + $0x40] sm:$0xff] }
  0xcd   : > { %2438 = vmatprep.mubr.f32.mxu1 %v3500_v9  ;;  %2463 = vmatpush3.msra.mxu1 %v1336_v5 }
  0xce   : > { %2415 = vmatmul.mubr.f32.gmra.mxu0 %v3422_v33  ;;  %2439 = vmatmul.mubr.f32.gmra.mxu1 %v3503_v11  ;;  %v1331_v33 = vld [vmem:[#allocation9 + $0x38] sm:$0xff] }
  0xcf   : > { %2464 = vmatprep.subr.mxu1 %v1335_v13  ;;  %742 = vadd.xlane.f32.xlu1 %v700_v12  ;;  %v1324_v12 = vld [vmem:[#allocation9] sm:$0xff] }
  0xd0   : > { %2465 = vmatpush3.msra.mxu1 %v1335_v13  ;;  %639 = vadd.xlane.f32.xlu0 %v597_v15  ;;  %v603_v15 = vmul.f32 %v3364_v3, %v3462_v54 }
  0xd1   : > { %2466 = vmatprep.subr.mxu1 %v1334_v17  ;;  %2417 = vmatprep.mubr.f32.mxu0 %v3435_v40  ;;  %v3551_v40 = vld [vmem:[%s3336_s16 + $0xd0] sm:$0xff] }
  0xd2   : > { %2441 = vmatprep.mubr.f32.mxu1 %v3517_v19  ;;  %2467 = vmatpush3.msra.mxu1 %v1334_v17  ;;  %v565_v17 = vld [vmem:[%s3344_s24 + $0x88] sm:$0xff] }
  0xd3   : > { %2418 = vmatmul.mubr.f32.gmra.mxu0 %v3449_v47  ;;  %2442 = vmatmul.mubr.f32.gmra.mxu1 %v3520_v21  ;;  %v3561_v47 = vld [vmem:[%s3344_s24 + $0x70] sm:$0xff] }
  0xd4   : > { %2468 = vmatprep.subr.mxu1 %v1333_v23  ;;  %744 = vadd.xlane.f32.xlu1 %v701_v22  ;;  %v566_v22 = vld [vmem:[%s3344_s24 + $0x90] sm:$0xff] }
  0xd5   : > { %2469 = vmatpush3.msra.mxu1 %v1333_v23  ;;  %641 = vadd.xlane.f32.xlu0 %v598_v24  ;;  %v708_v54 = vmul.f32 %v3379_v8, %v566_v22  ;;  %v573_v24 = vld [vmem:[%s3344_s24 + $0xc8] sm:$0xff] }
  0xd6   : > { %2470 = vmatprep.subr.mxu1 %v1332_v27  ;;  %2420 = vmatprep.mubr.f32.mxu0 %v3459_v53  ;;  %v704_v53 = vmul.f32 %v3379_v8, %v3561_v47 }
  0xd7   : > { %2444 = vmatprep.mubr.f32.mxu1 %v3534_v29  ;;  %2471 = vmatpush3.msra.mxu1 %v1332_v27  ;;  %v574_v27 = vld [vmem:[%s3344_s24 + $0xd0] sm:$0xff] }
  0xd8   : > { %2421 = vmatmul.mubr.f32.gmra.mxu0 %v3479_v61  ;;  %2445 = vmatmul.mubr.f32.gmra.mxu1 %v3537_v30  ;;  %v531_v61 = vld [vmem:[%s3336_s16 + $0x78] sm:$0xff]  ;;  %s4204_s16 = scalar_lea.vmem [#allocation12], %s3332_s18  ;;  %s2013_s18 = scalar_lea.sflag [#allocation5], %s3329_s12 }
  0xd9   : > { %2472 = vmatprep.subr.mxu1 %v1331_v33  ;;  %746 = vadd.xlane.f32.xlu1 %v702_v31  ;;  %v602_v5 = vmul.f32 %v3364_v3, %v531_v61  ;;  %v575_v31 = vld [vmem:[%s3344_s24 + $0xd8] sm:$0xff] }
  0xda   : > { %2473 = vmatpush3.msra.mxu1 %v1331_v33  ;;  %643 = vadd.xlane.f32.xlu0 %v599_v34  ;;  %v717_v33 = vmul.f32 %v3379_v8, %v575_v31  ;;  %v576_v34 = vld [vmem:[%s3344_s24 + $0xe0] sm:$0xff] }
  0xdb   : > { %2474 = vmatprep.subr.mxu1 %v1330_v36  ;;  %2423 = vmatprep.mubr.f32.mxu0 %v526_v6  ;;  %v3587_v6 = vld [vmem:[%s3344_s24 + $0x80] sm:$0xff] }
  0xdc   : > { %2447 = vmatprep.mubr.f32.mxu1 %v3551_v40  ;;  %2475 = vmatpush3.msra.mxu1 %v1330_v36  ;;  %v706_v13 = vmul.f32 %v3379_v8, %v3587_v6  ;;  %v1682_v36 = vld [vmem:[#allocation11 + $0x70] sm:$0xff] }
  0xdd   : > { %2424 = vmatmul.mubr.f32.gmra.mxu0 %v527_v18  ;;  %2448 = vmatmul.mubr.f32.gmra.mxu1 %v3554_v42  ;;  %v604_v18 = vmul.f32 %v3364_v3, %v3465_v55  ;;  %v568_v55 = vld [vmem:[%s3344_s24 + $0xa0] sm:$0xff] }
  0xde   : > { %2476 = vmatprep.subr.mxu1 %v1329_v44  ;;  %748 = vadd.xlane.f32.xlu1 %v703_v43  ;;  %v577_v43 = vld [vmem:[%s3344_s24 + $0xe8] sm:$0xff] }
  0xdf   : > { %2477 = vmatpush3.msra.mxu1 %v1329_v44  ;;  %645 = vadd.xlane.f32.xlu0 %v600_v45  ;;  %v1681_v44 = vld [vmem:[#allocation11 + $0x68] sm:$0xff]  ;;  %v616_v45 = vmul.f32 %v3364_v3, %v3569_v51 }
  0xe0   : > { %2478 = vmatprep.subr.mxu1 %v1328_v48  ;;  %2426 = vmatprep.mubr.f32.mxu0 %v528_v28  ;;  %v716_v28 = vmul.f32 %v3379_v8, %v574_v27 }
  0xe1   : > { %2450 = vmatprep.mubr.f32.mxu1 %v3566_v50  ;;  %2479 = vmatpush3.msra.mxu1 %v1328_v48  ;;  %v1680_v48 = vld [vmem:[#allocation11 + $0x60] sm:$0xff] }
  0xe2   : > { %2427 = vmatmul.mubr.f32.gmra.mxu0 %v529_v37  ;;  %2451 = vmatmul.mubr.f32.gmra.mxu1 %v3569_v51  ;;  %v718_v37 = vmul.f32 %v3379_v8, %v576_v34 }
  0xe3   : > { %2480 = vmatprep.subr.mxu1 %v1327_v56  ;;  %750 = vadd.xlane.f32.xlu1 %v704_v53  ;;  %v579_v53 = vld [vmem:[%s3344_s24 + $0xf8] sm:$0xff] }
  0xe4   : > { %2481 = vmatpush3.msra.mxu1 %v1327_v56  ;;  %647 = vadd.xlane.f32.xlu0 %v601_v57  ;;  %v1679_v56 = vld [vmem:[#allocation11 + $0x58] sm:$0xff]  ;;  %v721_v51 = vmul.f32 %v3379_v8, %v579_v53  ;;  %v1678_v57 = vld [vmem:[#allocation11 + $0x50] sm:$0xff] }
  0xe5   : > { %2482 = vmatprep.subr.mxu1 %v1326_v60  ;;  %2429 = vmatprep.mubr.f32.mxu0 %v530_v49 }
  0xe6   : > { %2453 = vmatprep.mubr.f32.mxu1 %v3581_v0  ;;  %2483 = vmatpush3.msra.mxu1 %v1326_v60 }
  0xe7   : > { %2430 = vmatmul.mubr.f32.gmra.mxu0 %v531_v61  ;;  %2454 = vmatmul.mubr.f32.gmra.mxu1 %v3429_v38  ;;  %v707_v38 = vmul.f32 %v3379_v8, %v565_v17  ;;  %v1676_v61 = vld [vmem:[#allocation11 + $0x40] sm:$0xff] }
  0xe8   : > { %2484 = vmatprep.subr.mxu1 %v1325_v2  ;;  %752 = vadd.xlane.f32.xlu1 %v705_v1  ;;  %v1675_v1 = vld [vmem:[#allocation11 + $0x38] sm:$0xff] }
  0xe9   : > { %2485 = vmatpush3.msra.mxu1 %v1325_v2  ;;  %649 = vadd.xlane.f32.xlu0 %v602_v5  ;;  %v1674_v2 = vld [vmem:[#allocation11 + $0x30] sm:$0xff]  ;;  %v1673_v5 = vld [vmem:[#allocation11 + $0x28] sm:$0xff] }
  0xea   : > { %2486 = vmatprep.subr.mxu1 %v1324_v12  ;;  %2488 = vmatprep.mubr.f32.mxu1 %v3382_v10  ;;  %v567_v10 = vld [vmem:[%s3344_s24 + $0x98] sm:$0xff] }
  0xeb   : > { %2487 = vmatpush3.msra.mxu1 %v1324_v12 }
  0xec   : > { %2489 = vmatmul.mubr.f32.vlgmr.msra.gmra.mxu1 %v3374_v7  ;;  %754 = vadd.xlane.f32.xlu1 %v706_v13  ;;  %v605_v7 = vmul.f32 %v3364_v3, %v3482_v62  ;;  %v569_v62 = vld [vmem:[%s3344_s24 + $0xa8] sm:$0xff]  ;;  %v1671_v13 = vld [vmem:[#allocation11 + $0x18] sm:$0xff] }
  0xed   : > { %651 = vadd.xlane.f32.xlu0 %v603_v15  ;;  %2491 = vmatprep.mubr.f32.mxu1 %v3389_v14  ;;  %v709_v14 = vmul.f32 %v3379_v8, %v567_v10 }
  0xf0   : > { %2492 = vmatmul.mubr.f32.gmra.mxu1 %v3399_v20  ;;  %756 = vadd.xlane.f32.xlu1 %v707_v38  ;;  %v606_v20 = vmul.f32 %v3364_v3, %v3485_v63  ;;  %v570_v63 = vld [vmem:[%s3344_s24 + $0xb0] sm:$0xff] }
  0xf1   : > { %653 = vadd.xlane.f32.xlu0 %v604_v18  ;;  %2494 = vmatprep.mubr.f32.mxu1 %v3409_v26  ;;  %v710_v26 = vmul.f32 %v3379_v8, %v568_v55  ;;  %v1670_v38 = vld [vmem:[#allocation11 + $0x10] sm:$0xff]  ;;  %v1669_v18 = vld [vmem:[#allocation11 + $0x8] sm:$0xff] }
  0xf4   : > { %2495 = vmatmul.mubr.f32.gmra.mxu1 %v3419_v32  ;;  %758 = vadd.xlane.f32.xlu1 %v708_v54  ;;  %v607_v32 = vmul.f32 %v3364_v3, %v3500_v9  ;;  %v571_v9 = vld [vmem:[%s3344_s24 + $0xb8] sm:$0xff] }
  0xf5   : > { %655 = vadd.xlane.f32.xlu0 %v605_v7  ;;  %2497 = vmatprep.mubr.f32.mxu1 %v3432_v39  ;;  %v711_v39 = vmul.f32 %v3379_v8, %v569_v62 }
  0xf8   : > { %2498 = vmatmul.mubr.f32.gmra.mxu1 %v3446_v46  ;;  %760 = vadd.xlane.f32.xlu1 %v709_v14  ;;  %v608_v46 = vmul.f32 %v3364_v3, %v3503_v11  ;;  %v610_v11 = vmul.f32 %v3364_v3, %v3520_v21  ;;  %v612_v21 = vmul.f32 %v3364_v3, %v3537_v30 }
  0xf9   : > { %657 = vadd.xlane.f32.xlu0 %v606_v20  ;;  %2500 = vmatprep.mubr.f32.mxu1 %v3456_v52  ;;  %v712_v52 = vmul.f32 %v3379_v8, %v570_v63  ;;  %v614_v30 = vmul.f32 %v3364_v3, %v3554_v42  ;;  %v719_v42 = vmul.f32 %v3379_v8, %v577_v43 }
  0xfc   : > { %2501 = vmatmul.mubr.f32.gmra.mxu1 %v3474_v59  ;;  %762 = vadd.xlane.f32.xlu1 %v710_v26  ;;  %v609_v59 = vmul.f32 %v3364_v3, %v3517_v19  ;;  %v611_v19 = vmul.f32 %v3364_v3, %v3534_v29  ;;  %v613_v29 = vmul.f32 %v3364_v3, %v3551_v40 }
  0xfd   : > { %659 = vadd.xlane.f32.xlu0 %v607_v32  ;;  %2503 = vmatprep.mubr.f32.mxu1 %v3494_v4  ;;  %v713_v4 = vmul.f32 %v3379_v8, %v571_v9  ;;  %v615_v40 = vmul.f32 %v3364_v3, %v3566_v50  ;;  %v617_v50 = vmul.f32 %v3364_v3, %v3581_v0  ;;  %v1677_v3 = vld [vmem:[#allocation11 + $0x48] sm:$0xff] }
 0x100   : > { %2504 = vmatmul.mubr.f32.gmra.mxu1 %v3511_v16  ;;  %764 = vadd.xlane.f32.xlu1 %v711_v39  ;;  %v572_v16 = vld [vmem:[%s3344_s24 + $0xc0] sm:$0xff] }
 0x101   : > { %661 = vadd.xlane.f32.xlu0 %v608_v46  ;;  %2506 = vmatprep.mubr.f32.mxu1 %v3528_v25  ;;  %v714_v23 = vmul.f32 %v3379_v8, %v572_v16  ;;  %v715_v25 = vmul.f32 %v3379_v8, %v573_v24 }
 0x104   : > { %2507 = vmatmul.mubr.f32.gmra.mxu1 %v3545_v35  ;;  %766 = vadd.xlane.f32.xlu1 %v712_v52  ;;  %v1683_v35 = vld [vmem:[#allocation11 + $0x78] sm:$0xff] }
 0x105   : > { %663 = vadd.xlane.f32.xlu0 %v609_v59  ;;  %2509 = vmatprep.mubr.f32.mxu1 %v3561_v47  ;;  %v578_v47 = vld [vmem:[%s3344_s24 + $0xf0] sm:$0xff] }
 0x106   : > { %2536 = vmatprep.subr.mxu0 %v1683_v35  ;;  %v720_v49 = vmul.f32 %v3379_v8, %v578_v47 }
 0x107   : > { %2537 = vmatpush3.msra.mxu0 %v1683_v35 }
 0x108   : > { %2510 = vmatmul.mubr.f32.gmra.mxu1 %v3576_v58  ;;  %768 = vadd.xlane.f32.xlu1 %v713_v4 }
 0x109   : > { %665 = vadd.xlane.f32.xlu0 %v610_v11  ;;  %2512 = vmatprep.mubr.f32.mxu1 %v3587_v6 }
 0x10a   : > { %2538 = vmatprep.subr.mxu0 %v1682_v36 }
 0x10b   : > { %2539 = vmatpush3.msra.mxu0 %v1682_v36 }
 0x10c   : > { %2513 = vmatmul.mubr.f32.gmra.mxu1 %v565_v17  ;;  %770 = vadd.xlane.f32.xlu1 %v714_v23 }
 0x10d   : > { %667 = vadd.xlane.f32.xlu0 %v611_v19  ;;  %2515 = vmatprep.mubr.f32.mxu1 %v566_v22  ;;  %v1668_v22 = vld [vmem:[#allocation11] sm:$0xff] }
 0x10e   : > { %2540 = vmatprep.subr.mxu0 %v1681_v44 }
 0x10f   : > { %2541 = vmatpush3.msra.mxu0 %v1681_v44 }
 0x110   : > { %2516 = vmatmul.mubr.f32.gmra.mxu1 %v567_v10  ;;  %772 = vadd.xlane.f32.xlu1 %v715_v25  ;;  %v3682_v25 = vstv %s818_s15 }
 0x111   : > { %669 = vadd.xlane.f32.xlu0 %v612_v21  ;;  %2518 = vmatprep.mubr.f32.mxu1 %v568_v55 }
 0x112   : > { %2542 = vmatprep.subr.mxu0 %v1680_v48 }
 0x113   : > { %2543 = vmatpush3.msra.mxu0 %v1680_v48 }
 0x114   : > { %2519 = vmatmul.mubr.f32.gmra.mxu1 %v569_v62  ;;  %774 = vadd.xlane.f32.xlu1 %v716_v28 }
 0x115   : > { %671 = vadd.xlane.f32.xlu0 %v613_v29  ;;  %2521 = vmatprep.mubr.f32.mxu1 %v570_v63 }
 0x116   : > { %2544 = vmatprep.subr.mxu0 %v1679_v56 }
 0x117   : > { %2545 = vmatpush3.msra.mxu0 %v1679_v56 }
 0x118   : > { %2522 = vmatmul.mubr.f32.gmra.mxu1 %v571_v9  ;;  %776 = vadd.xlane.f32.xlu1 %v717_v33 }
 0x119   : > { %673 = vadd.xlane.f32.xlu0 %v614_v30  ;;  %2524 = vmatprep.mubr.f32.mxu1 %v572_v16 }
 0x11a   : > { %2546 = vmatprep.subr.mxu0 %v1678_v57 }
 0x11b   : > { %2547 = vmatpush3.msra.mxu0 %v1678_v57 }
 0x11c   : > { %2525 = vmatmul.mubr.f32.gmra.mxu1 %v573_v24  ;;  %778 = vadd.xlane.f32.xlu1 %v718_v37 }
 0x11d   : > { %675 = vadd.xlane.f32.xlu0 %v615_v40  ;;  %2527 = vmatprep.mubr.f32.mxu1 %v574_v27 }
 0x11e   : > { %2548 = vmatprep.subr.mxu0 %v1677_v3 }
 0x11f   : > { %2549 = vmatpush3.msra.mxu0 %v1677_v3 }
 0x120   : > { %2528 = vmatmul.mubr.f32.gmra.mxu1 %v575_v31  ;;  %780 = vadd.xlane.f32.xlu1 %v719_v42 }
 0x121   : > { %677 = vadd.xlane.f32.xlu0 %v616_v45  ;;  %2530 = vmatprep.mubr.f32.mxu1 %v576_v34 }
 0x122   : > { %2550 = vmatprep.subr.mxu0 %v1676_v61 }
 0x123   : > { %2551 = vmatpush3.msra.mxu0 %v1676_v61 }
 0x124   : > { %2531 = vmatmul.mubr.f32.gmra.mxu1 %v577_v43  ;;  %782 = vadd.xlane.f32.xlu1 %v720_v49 }
 0x125   : > { %679 = vadd.xlane.f32.xlu0 %v617_v50  ;;  %2533 = vmatprep.mubr.f32.mxu1 %v578_v47 }
 0x126   : > { %2552 = vmatprep.subr.mxu0 %v1675_v1 }
 0x127   : > { %v3670_v58 = vpop.xlane.xlu1 %621  ;;  %2553 = vmatpush3.msra.mxu0 %v1675_v1 }
 0x128   : > { %v3672_v60 = vpop.xlane.xlu0 %619  ;;  %2534 = vmatmul.mubr.f32.gmra.mxu1 %v579_v53  ;;  %784 = vadd.xlane.f32.xlu1 %v721_v51 }
 0x129   : > { %681 = vadd.xlane.f32.xlu0 %v3439_v41  ;;  %2554 = vmatprep.subr.mxu0 %v1674_v2  ;;  %v1672_v41 = vld [vmem:[#allocation11 + $0x20] sm:$0xff] }
 0x12a   : > { %2555 = vmatpush3.msra.mxu0 %v1674_v2 }
 0x12b   : > { %2556 = vmatprep.subr.mxu0 %v1673_v5 }
 0x12c   : > { %v725_v0 = vpop.xlane.xlu1 %724  ;;  %v3675_v8 = vpop.xlane.xlu0 %722  ;;  %2557 = vmatpush3.msra.mxu0 %v1673_v5 }
 0x12d   : > { %2558 = vmatprep.subr.mxu0 %v1672_v41  ;;  %v787_v24 = vsub.f32 %v3670_v58, %v725_v0  ;;  %v786_v21 = vsub.f32 %v3672_v60, %v3675_v8 }
 0x12e   : > { %2559 = vmatpush3.msra.mxu0 %v1672_v41 }
 0x12f   : > { %2560 = vmatprep.subr.mxu0 %v1671_v13  ;;  %v821_v33 = vadd.f32 %v3682_v25, %v787_v24  ;;  %v820_v34 = vadd.f32 %v3682_v25, %v786_v21 }
 0x130   : > { %2561 = vmatpush3.msra.mxu0 %v1671_v13 }
 0x131   : > { %v727_v6 = vpop.xlane.xlu1 %726  ;;  %v624_v12 = vpop.xlane.xlu0 %623  ;;  %2562 = vmatprep.subr.mxu0 %v1670_v38  ;;  %v2186_v45 = vmul.f32 -1.442695, %v821_v33  ;;  %v2185_v49 = vmul.f32 -1.442695, %v820_v34 }
 0x132   : > { %2563 = vmatpush3.msra.mxu0 %v1670_v38  ;;  %v788_v28 = vsub.f32 %v624_v12, %v727_v6 }
 0x133   : > { %2564 = vmatprep.subr.mxu0 %v1669_v18  ;;  %2727 = vpow2.f32 %v2186_v45 }
 0x134   : > { %2565 = vmatpush3.msra.mxu0 %v1669_v18  ;;  %v822_v36 = vadd.f32 %v3682_v25, %v788_v28  ;;  %2729 = vpow2.f32 %v2185_v49 }
 0x135   : > { %2566 = vmatprep.subr.mxu0 %v1668_v22 }
 0x136   : > { %v729_v15 = vpop.xlane.xlu1 %728  ;;  %v626_v17 = vpop.xlane.xlu0 %625  ;;  %2567 = vmatpush3.msra.mxu0 %v1668_v22  ;;  %v2187_v56 = vmul.f32 -1.442695, %v822_v36 }
 0x137   : > { %v789_v31 = vsub.f32 %v626_v17, %v729_v15 }
 0x138   : > { %2731 = vpow2.f32 %v2187_v56 }
 0x139   : > { %v823_v43 = vadd.f32 %v3682_v25, %v789_v31 }
 0x13b   : > { %v731_v54 = vpop.xlane.xlu1 %730  ;;  %v628_v7 = vpop.xlane.xlu0 %627  ;;  %v2188_v58 = vmul.f32 -1.442695, %v823_v43 }
 0x13c   : > { %v790_v30 = vsub.f32 %v628_v7, %v731_v54 }
 0x13d   : > { %2733 = vpow2.f32 %v2188_v58 }
 0x13e   : > { %v824_v47 = vadd.f32 %v3682_v25, %v790_v30 }
 0x140   : > { %v733_v10 = vpop.xlane.xlu1 %732  ;;  %v630_v14 = vpop.xlane.xlu0 %629  ;;  %v2189_v61 = vmul.f32 -1.442695, %v824_v47 }
 0x141   : > { %v791_v35 = vsub.f32 %v630_v14, %v733_v10 }
 0x142   : > { %2735 = vpow2.f32 %v2189_v61 }
 0x143   : > { %v825_v50 = vadd.f32 %v3682_v25, %v791_v35 }
 0x145   : > { %v735_v20 = vpop.xlane.xlu1 %734  ;;  %v632_v55 = vpop.xlane.xlu0 %631  ;;  %v2190_v8 = vmul.f32 -1.442695, %v825_v50 }
 0x146   : > { %v792_v37 = vsub.f32 %v632_v55, %v735_v20 }
 0x147   : > { %2737 = vpow2.f32 %v2190_v8 }
 0x148   : > { %v826_v51 = vadd.f32 %v3682_v25, %v792_v37 }
 0x14a   : > { %v737_v26 = vpop.xlane.xlu1 %736  ;;  %v634_v32 = vpop.xlane.xlu0 %633  ;;  %v2191_v5 = vmul.f32 -1.442695, %v826_v51 }
 0x14b   : > { %v793_v44 = vsub.f32 %v634_v32, %v737_v26 }
 0x14c   : > { %2739 = vpow2.f32 %v2191_v5 }
 0x14d   : > { %v827_v60 = vadd.f32 %v3682_v25, %v793_v44 }
 0x14e   : > { %v739_v62 = vpop.xlane.xlu1 %738 }
 0x14f   : > { %v636_v39 = vpop.xlane.xlu0 %635  ;;  %v2192_v41 = vmul.f32 -1.442695, %v827_v60 }
 0x150   : > { %v794_v48 = vsub.f32 %v636_v39, %v739_v62  ;;  %v2728_v62 = vpop.eup %2727 }
 0x151   : > { %2741 = vpow2.f32 %v2192_v41 }
 0x152   : > { %v828_v0 = vadd.f32 %v3682_v25, %v794_v48 }
 0x153   : > { %v741_v46 = vpop.xlane.xlu1 %740 }
 0x154   : > { %v638_v63 = vpop.xlane.xlu0 %637  ;;  %v2193_v17 = vmul.f32 -1.442695, %v828_v0 }
 0x155   : > { %v795_v53 = vsub.f32 %v638_v63, %v741_v46  ;;  %v2730_v46 = vpop.eup %2729 }
 0x156   : > { %2743 = vpow2.f32 %v2193_v17  ;;  %v948_v24 = vadd.f32 1.0, %v2730_v46 }
 0x157   : > { %v829_v1 = vadd.f32 %v3682_v25, %v795_v53 }
 0x158   : > { %v743_v52 = vpop.xlane.xlu1 %742 }
 0x159   : > { %v640_v59 = vpop.xlane.xlu0 %639  ;;  %v2194_v38 = vmul.f32 -1.442695, %v829_v1 }
 0x15a   : > { %v796_v2 = vsub.f32 %v640_v59, %v743_v52  ;;  %v2732_v52 = vpop.eup %2731 }
 0x15b   : > { %2745 = vpow2.f32 %v2194_v38  ;;  %v950_v31 = vadd.f32 1.0, %v2732_v52 }
 0x15c   : > { %v830_v18 = vadd.f32 %v3682_v25, %v796_v2 }
 0x15d   : > { %v745_v9 = vpop.xlane.xlu1 %744 }
 0x15e   : > { %v642_v4 = vpop.xlane.xlu0 %641  ;;  %v2195_v14 = vmul.f32 -1.442695, %v830_v18 }
 0x15f   : > { %v797_v6 = vsub.f32 %v642_v4, %v745_v9  ;;  %v2734_v9 = vpop.eup %2733  ;;  %v949_v4 = vadd.f32 1.0, %v2728_v62 }
 0x160   : > { %2747 = vpow2.f32 %v2195_v14  ;;  %v951_v35 = vadd.f32 1.0, %v2734_v9 }
 0x161   : > { %v831_v22 = vadd.f32 %v3682_v25, %v797_v6 }
 0x162   : > { %v747_v11 = vpop.xlane.xlu1 %746 }
 0x163   : > { %v644_v16 = vpop.xlane.xlu0 %643  ;;  %v2196_v20 = vmul.f32 -1.442695, %v831_v22 }
 0x164   : > { %v798_v13 = vsub.f32 %v644_v16, %v747_v11  ;;  %v2736_v16 = vpop.eup %2735 }
 0x165   : > { %2749 = vpow2.f32 %v2196_v20  ;;  %v2738_v28 = vpop.eup %2737  ;;  %v952_v45 = vadd.f32 1.0, %v2736_v16 }
 0x166   : > { %v832_v7 = vadd.f32 %v3682_v25, %v798_v13  ;;  %v2740_v34 = vpop.eup %2739 }
 0x167   : > { %v3677_v23 = vpop.xlane.xlu1 %748  ;;  %v2742_v44 = vpop.eup %2741 }
 0x168   : > { %v3679_v19 = vpop.xlane.xlu0 %645  ;;  %v2197_v26 = vmul.f32 -1.442695, %v832_v7  ;;  %v2744_v48 = vpop.eup %2743  ;;  %v955_v56 = vadd.f32 1.0, %v2742_v44 }
 0x169   : > { %v799_v33 = vsub.f32 %v3679_v19, %v3677_v23  ;;  %v953_v23 = vadd.f32 1.0, %v2738_v28  ;;  %v2746_v50 = vpop.eup %2745 }
 0x16a   : > { %2751 = vpow2.f32 %v2197_v26  ;;  %v957_v0 = vadd.f32 1.0, %v2746_v50 }
 0x16b   : > { %2753 = vrcp.f32 %v949_v4 }
 0x16c   : > { %v3686_v27 = vpop.xlane.xlu1 %750  ;;  %2755 = vrcp.f32 %v948_v24 }
 0x16d   : > { %v3688_v29 = vpop.xlane.xlu0 %647  ;;  %2757 = vrcp.f32 %v950_v31  ;;  %v2748_v2 = vpop.eup %2747 }
 0x16e   : > { %v800_v36 = vsub.f32 %v3688_v29, %v3686_v27  ;;  %v954_v27 = vadd.f32 1.0, %v2740_v34  ;;  %v833_v29 = vadd.f32 %v3682_v25, %v799_v33  ;;  %2759 = vrcp.f32 %v951_v35 }
 0x16f   : > { %2761 = vrcp.f32 %v952_v45  ;;  %v958_v22 = vadd.f32 1.0, %v2748_v2 }
 0x170   : > { %v834_v51 = vadd.f32 %v3682_v25, %v800_v36  ;;  %2763 = vrcp.f32 %v953_v23  ;;  %v2198_v5 = vmul.f32 -1.442695, %v833_v29 }
 0x171   : > { %v3693_v40 = vpop.xlane.xlu1 %752  ;;  %2765 = vrcp.f32 %v954_v27 }
 0x172   : > { %v3696_v42 = vpop.xlane.xlu0 %649  ;;  %v2750_v13 = vpop.eup %2749  ;;  %2767 = vrcp.f32 %v955_v56  ;;  %v2199_v17 = vmul.f32 -1.442695, %v834_v51 }
 0x173   : > { %v801_v47 = vsub.f32 %v3696_v42, %v3693_v40  ;;  %v956_v40 = vadd.f32 1.0, %v2744_v48  ;;  %v959_v20 = vadd.f32 1.0, %v2750_v13 }
 0x175   : > { %v3701_v57 = vpop.xlane.xlu1 %754  ;;  %v835_v42 = vadd.f32 %v3682_v25, %v801_v47  ;;  %2769 = vrcp.f32 %v956_v40 }
 0x176   : > { %v3704_v3 = vpop.xlane.xlu0 %651  ;;  %2771 = vrcp.f32 %v957_v0 }
 0x177   : > { %v802_v60 = vsub.f32 %v3704_v3, %v3701_v57  ;;  %v2752_v38 = vpop.eup %2751  ;;  %2773 = vpow2.f32 %v2198_v5 }
 0x178   : > { %2775 = vpow2.f32 %v2199_v17  ;;  %v3785_v9 = vpop.eup %2753 }
 0x179   : > { %v3708_v12 = vpop.xlane.xlu1 %756  ;;  %v3791_v28 = vpop.eup %2755 }
 0x17a   : > { %v3710_v15 = vpop.xlane.xlu0 %653  ;;  %v3795_v33 = vpop.eup %2757 }
 0x17b   : > { %v803_v8 = vsub.f32 %v3710_v15, %v3708_v12  ;;  %v2200_v12 = vmul.f32 -1.442695, %v835_v42  ;;  %v836_v15 = vadd.f32 %v3682_v25, %v802_v60  ;;  %v3801_v44 = vpop.eup %2759 }
 0x17c   : > { %v3805_v47 = vpop.eup %2761 }
 0x17d   : > { %v3714_v54 = vpop.xlane.xlu1 %758  ;;  %v837_v7 = vadd.f32 %v3682_v25, %v803_v8  ;;  %2777 = vpow2.f32 %v2200_v12  ;;  %v2201_v52 = vmul.f32 -1.442695, %v836_v15  ;;  %v3809_v23 = vpop.eup %2763 }
 0x17e   : > { %v3717_v10 = vpop.xlane.xlu0 %655  ;;  %2779 = vrcp.f32 %v958_v22  ;;  %v3813_v27 = vpop.eup %2765 }
 0x17f   : > { %v804_v57 = vsub.f32 %v3717_v10, %v3714_v54  ;;  %v960_v54 = vadd.f32 1.0, %v2752_v38  ;;  %v2202_v4 = vmul.f32 -1.442695, %v837_v7  ;;  %2781 = vrcp.f32 %v959_v20  ;;  %v3820_v56 = vpop.eup %2767 }
 0x181   : > { %v3719_v55 = vpop.xlane.xlu1 %760  ;;  %v838_v10 = vadd.f32 %v3682_v25, %v804_v57  ;;  %2783 = vrcp.f32 %v960_v54  ;;  %v3839_v57 = vld [vmem:[%s4365_s6] ss:$0 sm:$0xff] }
 0x182   : > { %v3721_v32 = vpop.xlane.xlu0 %657  ;;  %2785 = vpow2.f32 %v2201_v52  ;;  %v3822_v51 = vpop.eup %2769 }
 0x183   : > { %v2203_v34 = vmul.f32 -1.442695, %v838_v10  ;;  %v805_v35 = vsub.f32 %v3721_v32, %v3719_v55  ;;  %2787 = vpow2.f32 %v2202_v4  ;;  %v3828_v60 = vpop.eup %2771 }
 0x184   : > { %v3723_v39 = vpop.f32.mrf.mxu1  ;;  %v3731_v21 = vpop.f32.mrf.mxu0 }
 0x185   : > { %v3725_v63 = vpop.xlane.xlu1 %762  ;;  %2789 = vpow2.f32 %v2203_v34  ;;  %v839_v55 = vadd.f32 %v3682_v25, %v805_v35  ;;  %v2774_v8 = vpop.eup %2773 }
 0x186   : > { %v3727_v59 = vpop.xlane.xlu0 %659  ;;  %v3729_v11 = vpop.f32.mrf.mxu1 }
 0x187   : > { %v3745_v19 = vpop.f32.mrf.mxu0  ;;  %v2204_v2 = vmul.f32 -1.442695, %v839_v55  ;;  %v806_v5 = vsub.f32 %v3727_v59, %v3725_v63  ;;  %v2776_v17 = vpop.eup %2775  ;;  %v961_v59 = vadd.f32 1.0, %v2774_v8  ;;  %v1171_v8 = vadd.f32 %v3731_v21, %v3839_v57 }
 0x188   : > { %v962_v55 = vadd.f32 1.0, %v2776_v17 }
 0x189   : > { %v3735_v30 = vpop.xlane.xlu1 %764  ;;  %v3741_v43 = vpop.f32.mrf.mxu1  ;;  %2791 = vpow2.f32 %v2204_v2  ;;  %v840_v20 = vadd.f32 %v3682_v25, %v806_v5  ;;  %v1166_v2 = vadd.f32 %v3839_v57, %v3745_v19  ;;  %v1573_v21 = vmul.f32 %v3785_v9, %v1171_v8 }
 0x18a   : > { %v3739_v37 = vpop.xlane.xlu0 %661  ;;  %v3762_v1 = vpop.f32.mrf.mxu0  ;;  %2793 = vrcp.f32 %v961_v59 }
 0x18b   : > { %v3747_v49 = vpop.f32.mrf.mxu1  ;;  %v2778_v12 = vpop.eup %2777  ;;  %v807_v54 = vsub.f32 %v3739_v37, %v3735_v30  ;;  %2795 = vrcp.f32 %v962_v55  ;;  %v2205_v19 = vmul.f32 -1.442695, %v840_v20  ;;  %v1572_v8 = vmul.f32 %v3791_v28, %v1166_v2 }
 0x18c   : > { %v3776_v14 = vpop.f32.mrf.mxu0  ;;  %v3848_v63 = vpop.eup %2779  ;;  %v963_v37 = vadd.f32 1.0, %v2778_v12  ;;  %v3890_v12 = vld [vmem:[%s4367_s8] ss:$0 sm:$0xff] }
 0x18d   : > { %v3750_v53 = vpop.xlane.xlu1 %766  ;;  %v3858_v35 = vpop.eup %2781  ;;  %v841_v4 = vadd.f32 %v3682_v25, %v807_v54 }
 0x18e   : > { %v3753_v58 = vpop.xlane.xlu0 %663  ;;  %v3758_v61 = vpop.f32.mrf.mxu1  ;;  %2797 = vrcp.f32 %v963_v37 }
 0x18f   : > { %v3787_v16 = vpop.f32.mrf.mxu0  ;;  %v3865_v30 = vpop.eup %2783  ;;  %v808_v34 = vsub.f32 %v3753_v58, %v3750_v53  ;;  %v1176_v53 = vadd.f32 %v3839_v57, %v3776_v14  ;;  %2799 = vpow2.f32 %v2205_v19 }
 0x190   : > { %v3766_v41 = vpop.f32.mrf.mxu1  ;;  %v2786_v17 = vpop.eup %2785  ;;  %v1191_v59 = vadd.f32 %v3787_v16, %v3839_v57 }
 0x191   : > { %v3764_v6 = vpop.xlane.xlu1 %768  ;;  %v3807_v48 = vpop.f32.mrf.mxu0  ;;  %v842_v14 = vadd.f32 %v3682_v25, %v808_v34  ;;  %v1574_v16 = vmul.f32 %v3795_v33, %v1176_v53  ;;  %v4404_v53 = vsub.f32 1.0, %v3791_v28 }
 0x192   : > { %v3770_v3 = vpop.xlane.xlu0 %665  ;;  %v1186_v2 = vadd.f32 %v3839_v57, %v3807_v48  ;;  %v3922_v19 = vmul.f32 %v3809_v23, %v1191_v59  ;;  %v4403_v48 = vsub.f32 1.0, %v3785_v9 }
 0x193   : > { %v3773_v18 = vpop.f32.mrf.mxu1  ;;  %v3824_v40 = vpop.f32.mrf.mxu0 }
 0x194   : > { %v1576_v59 = vmul.f32 %v3805_v47, %v1186_v2  ;;  %v1201_v9 = vadd.f32 %v3824_v40, %v3839_v57 }
 0x195   : > { %v3778_v26 = vpop.xlane.xlu1 %770  ;;  %v3783_v46 = vpop.f32.mrf.mxu1 }
 0x196   : > { %v3781_v62 = vpop.xlane.xlu0 %667  ;;  %v3843_v15 = vpop.f32.mrf.mxu0 }
 0x198   : > { %v3789_v24 = vpop.f32.mrf.mxu1  ;;  %v3874_v5 = vpop.f32.mrf.mxu0 }
 0x199   : > { %4396 = vst [vmem:[#allocation21_spill] sm:$0xff] %v3789_v24  ;;  %v3793_v31 = vpop.xlane.xlu1 %772 }
 0x19a   : > { %v3799_v36 = vpop.xlane.xlu0 %669  ;;  %v3803_v45 = vpop.f32.mrf.mxu1 }
 0x19b   : > { %v3905_v37 = vpop.f32.mrf.mxu0 }
 0x19d   : > { %v3811_v50 = vpop.xlane.xlu1 %774  ;;  %v3818_v29 = vpop.f32.mrf.mxu1 }
 0x19e   : > { %v3816_v32 = vpop.xlane.xlu0 %671  ;;  %4397 = vst [vmem:[#allocation22_spill] sm:$0xff] %v3818_v29  ;;  %v2788_v29 = vpop.eup %2787 }
 0x19f   : > { %v3826_v42 = vpop.f32.mrf.mxu1  ;;  %v2790_v54 = vpop.eup %2789  ;;  %v965_v55 = vadd.f32 1.0, %v2788_v29  ;;  %v812_v28 = vsub.f32 %v3816_v32, %v3811_v50  ;;  %v4406_v50 = vsub.f32 1.0, %v3795_v33 }
 0x1a0   : > { %4398 = vst [vmem:[#allocation23_spill] sm:$0xff] %v3826_v42  ;;  %v2206_v42 = vmul.f32 -1.442695, %v841_v4  ;;  %v966_v29 = vadd.f32 1.0, %v2790_v54  ;;  %v811_v4 = vsub.f32 %v3799_v36, %v3793_v31  ;;  %v3924_v54 = vpop.f32.mrf.mxu0 }
 0x1a1   : > { %v3830_v0 = vpop.xlane.xlu1 %776 }
 0x1a2   : > { %v3834_v13 = vpop.xlane.xlu0 %673  ;;  %v3841_v38 = vpop.f32.mrf.mxu1 }
 0x1a3   : > { %4399 = vst [vmem:[#allocation24_spill] sm:$0xff] %v3841_v38  ;;  %v1181_v38 = vadd.f32 %v3762_v1, %v3839_v57 }
 0x1a4   : > { %v3852_v10 = vpop.f32.mrf.mxu1 }
 0x1a5   : > { %4400 = vst [vmem:[#allocation25_spill] sm:$0xff] %v3852_v10  ;;  %v3854_v52 = vpop.xlane.xlu1 %778  ;;  %v964_v10 = vadd.f32 1.0, %v2786_v17  ;;  %v3909_v24 = vmul.f32 %v3801_v44, %v1181_v38 }
 0x1a6   : > { %v3863_v7 = vpop.xlane.xlu0 %675 }
 0x1a7   : > { %v3867_v22 = vpop.f32.mrf.mxu1  ;;  %2801 = vrcp.f32 %v964_v10  ;;  %v2207_v10 = vmul.f32 -1.442695, %v842_v14  ;;  %v845_v14 = vadd.f32 %v3682_v25, %v811_v4  ;;  %v1196_v4 = vadd.f32 %v3839_v57, %v3843_v15 }
 0x1a8   : > { %4401 = vst [vmem:[#allocation26_spill] sm:$0xff] %v3867_v22  ;;  %2803 = vrcp.f32 %v965_v55 }
 0x1a9   : > { %v3884_v22 = vpop.f32.mrf.mxu1  ;;  %v3895_v58 = vpop.xlane.xlu1 %780  ;;  %2805 = vpow2.f32 %v2206_v42  ;;  %v2210_v33 = vmul.f32 -1.442695, %v845_v14  ;;  %v1578_v14 = vmul.f32 %v3813_v27, %v1196_v4 }
 0x1aa   : > { %4402 = vst [vmem:[#allocation27_spill] sm:$0xff] %v3884_v22  ;;  %v3897_v1 = vpop.xlane.xlu0 %677  ;;  %v809_v22 = vsub.f32 %v3770_v3, %v3764_v6  ;;  %v810_v6 = vsub.f32 %v3781_v62, %v3778_v26  ;;  %2807 = vrcp.f32 %v966_v29  ;;  %v2792_v42 = vpop.eup %2791  ;;  %v813_v29 = vsub.f32 %v3834_v13, %v3830_v0 }
 0x1ab   : > { %2809 = vpow2.f32 %v2207_v10  ;;  %v3959_v0 = vpop.eup %2793  ;;  %v967_v13 = vadd.f32 1.0, %v2792_v42  ;;  %v846_v10 = vadd.f32 %v3682_v25, %v812_v28 }
 0x1ac   : > { %v2490_v17 = vpop.f32.mrf.mxu1  ;;  %v843_v34 = vadd.f32 %v3682_v25, %v809_v22  ;;  %v844_v55 = vadd.f32 %v3682_v25, %v810_v6  ;;  %v4405_v6 = vsub.f32 1.0, %v3801_v44  ;;  %v3962_v44 = vmul.f32 %v3820_v56, %v1201_v9 }
 0x1ad   : > { %v1419_v20 = vadd.f32 %v2490_v17, %v3890_v12  ;;  %v3930_v31 = vpop.xlane.xlu1 %782  ;;  %v847_v9 = vadd.f32 %v3682_v25, %v813_v29 }
 0x1ae   : > { %v1413_v3 = vpop.f32.mrf.mxu1  ;;  %v3932_v36 = vpop.xlane.xlu0 %679 }
 0x1af   : > { %v1414_v38 = vadd.f32 %v3890_v12, %v1413_v3  ;;  %v1605_v26 = vmul.f32 %v1419_v20, %v4403_v48  ;;  %v2208_v48 = vmul.f32 -1.442695, %v843_v34  ;;  %v815_v34 = vsub.f32 %v3897_v1, %v3895_v58 }
 0x1b0   : > { %v2493_v62 = vpop.f32.mrf.mxu1  ;;  %v814_v58 = vsub.f32 %v3863_v7, %v3854_v52  ;;  %v1211_v7 = vadd.f32 %v3874_v5, %v3839_v57  ;;  %v816_v5 = vsub.f32 %v3932_v36, %v3930_v31 }
 0x1b1   : > { %v1604_v17 = vmul.f32 %v1414_v38, %v4404_v53  ;;  %v1429_v22 = vadd.f32 %v2493_v62, %v3890_v12  ;;  %v3947_v2 = vadd.f32 %v1605_v26, %v1573_v21  ;;  %v3953_v53 = vpop.f32.mrf.mxu0  ;;  %v2209_v21 = vmul.f32 -1.442695, %v844_v55  ;;  %v3967_v26 = vpop.eup %2795 }
 0x1b2   : > { %v1423_v20 = vpop.f32.mrf.mxu1  ;;  %v3973_v55 = vpop.eup %2797  ;;  %2811 = vpow2.f32 %v2208_v48 }
 0x1b3   : > { %v1424_v3 = vadd.f32 %v3890_v12, %v1423_v20  ;;  %v3943_v38 = vadd.f32 %v1604_v17, %v1572_v8  ;;  %v1607_v40 = vmul.f32 %v1429_v22, %v4405_v6  ;;  %v785_v17 = vpop.xlane.xlu1 %784  ;;  %v682_v22 = vpop.xlane.xlu0 %681  ;;  %v4407_v6 = vsub.f32 1.0, %v3809_v23 }
 0x1b4   : > { %v2496_v62 = vpop.f32.mrf.mxu1  ;;  %v3982_v28 = vpop.f32.mrf.mxu0  ;;  %2813 = vpow2.f32 %v2209_v21  ;;  %v817_v52 = vsub.f32 %v682_v22, %v785_v17  ;;  %v2211_v23 = vmul.f32 -1.442695, %v846_v10  ;;  %v848_v21 = vadd.f32 %v3682_v25, %v814_v58 }
 0x1b5   : > { %v1606_v32 = vmul.f32 %v1424_v3, %v4406_v50  ;;  %v1439_v8 = vadd.f32 %v2496_v62, %v3890_v12  ;;  %2568 = vmatprep.mubr.f32.mxu0 %v3943_v38  ;;  %v3979_v3 = vadd.f32 %v1607_v40, %v3909_v24  ;;  %v4408_v62 = vsub.f32 1.0, %v3805_v47  ;;  %v2800_v40 = vpop.eup %2799 }
 0x1b6   : > { %v1433_v15 = vpop.f32.mrf.mxu1  ;;  %2569 = vmatmul.mubr.f32.vlgmr.msra.gmra.mxu0 %v3947_v2  ;;  %v849_v24 = vadd.f32 %v3682_v25, %v815_v34  ;;  %2815 = vpow2.f32 %v2210_v33  ;;  %v1206_v47 = vadd.f32 %v3839_v57, %v3905_v37  ;;  %v1225_v33 = vpop.f32.mrf.mxu0  ;;  %v4409_v22 = vsub.f32 1.0, %v3820_v56 }
 0x1b7   : > { %v1434_v20 = vadd.f32 %v3890_v12, %v1433_v15  ;;  %v3971_v42 = vadd.f32 %v1606_v32, %v1574_v16  ;;  %v1609_v16 = vmul.f32 %v1439_v8, %v4407_v6  ;;  %v3997_v32 = vpop.eup %2801  ;;  %v2212_v8 = vmul.f32 -1.442695, %v847_v9 }
 0x1b8   : > { %v2499_v1 = vpop.f32.mrf.mxu1  ;;  %v4004_v17 = vpop.eup %2803  ;;  %v4410_v10 = vsub.f32 1.0, %v3813_v27  ;;  %2817 = vrcp.f32 %v967_v13  ;;  %v968_v31 = vadd.f32 1.0, %v2800_v40  ;;  %v2214_v36 = vmul.f32 -1.442695, %v849_v24 }
 0x1b9   : > { %v1608_v50 = vmul.f32 %v1434_v20, %v4408_v62  ;;  %v1449_v48 = vadd.f32 %v2499_v1, %v3890_v12  ;;  %2571 = vmatprep.mubr.f32.mxu0 %v3971_v42  ;;  %v4012_v9 = vadd.f32 %v1609_v16, %v3922_v19  ;;  %v2806_v58 = vpop.eup %2805  ;;  %v1580_v56 = vmul.f32 %v3822_v51, %v1206_v47  ;;  %v2431_v24 = vpop.f32.mrf.mxu0 }
 0x1ba   : > { %v1443_v29 = vpop.f32.mrf.mxu1  ;;  %2572 = vmatmul.mubr.f32.gmra.mxu0 %v3979_v3  ;;  %v4016_v62 = vpop.eup %2807  ;;  %2819 = vpow2.f32 %v2211_v23  ;;  %v1216_v13 = vadd.f32 %v3839_v57, %v3953_v53  ;;  %v2213_v16 = vmul.f32 -1.442695, %v848_v21  ;;  %v4412_v40 = vsub.f32 1.0, %v3822_v51 }
 0x1bb   : > { %v1444_v4 = vadd.f32 %v3890_v12, %v1443_v29  ;;  %v4002_v15 = vadd.f32 %v1608_v50, %v1576_v59  ;;  %v1611_v37 = vmul.f32 %v1449_v48, %v4409_v22  ;;  %v851_v59 = vadd.f32 %v3682_v25, %v817_v52  ;;  %v2810_v53 = vpop.eup %2809 }
 0x1bc   : > { %v2502_v34 = vpop.f32.mrf.mxu1  ;;  %2821 = vpow2.f32 %v2212_v8  ;;  %v850_v50 = vadd.f32 %v3682_v25, %v816_v5  ;;  %v4411_v52 = vsub.f32 1.0, %v3828_v60  ;;  %v1221_v25 = vadd.f32 %v3924_v54, %v3839_v57  ;;  %v1235_v54 = vpop.f32.mrf.mxu0 }
 0x1bd   : > { %v1610_v20 = vmul.f32 %v1444_v4, %v4410_v10  ;;  %v1459_v1 = vadd.f32 %v2502_v34, %v3890_v12  ;;  %2574 = vmatprep.mubr.f32.mxu0 %v4002_v15  ;;  %v1581_v4 = vmul.f32 %v3828_v60, %v1211_v7  ;;  %2823 = vpow2.f32 %v2214_v36 }
 0x1be   : > { %v1453_v6 = vpop.f32.mrf.mxu1  ;;  %2575 = vmatmul.mubr.f32.gmra.mxu0 %v4012_v9  ;;  %v2216_v8 = vmul.f32 -1.442695, %v851_v59  ;;  %2825 = vrcp.f32 %v968_v31  ;;  %v969_v5 = vadd.f32 1.0, %v2806_v58  ;;  %v1226_v22 = vadd.f32 %v3839_v57, %v1225_v33 }
 0x1bf   : > { %v1454_v27 = vadd.f32 %v3890_v12, %v1453_v6  ;;  %v4021_v19 = vadd.f32 %v1610_v20, %v1578_v14  ;;  %v1613_v29 = vmul.f32 %v1459_v1, %v4411_v52  ;;  %v4033_v14 = vadd.f32 %v1611_v37, %v3962_v44  ;;  %v2812_v37 = vpop.eup %2811 }
 0x1c0   : > { %v2505_v48 = vpop.f32.mrf.mxu1  ;;  %v1582_v44 = vmul.f32 %v3848_v63, %v1216_v13  ;;  %2827 = vpow2.f32 %v2213_v16  ;;  %v2215_v60 = vmul.f32 -1.442695, %v850_v50  ;;  %v4413_v10 = vsub.f32 1.0, %v3858_v35 }
 0x1c1   : > { %v1612_v47 = vmul.f32 %v1454_v27, %v4412_v40  ;;  %v1469_v23 = vadd.f32 %v2505_v48, %v3890_v12  ;;  %2577 = vmatprep.mubr.f32.mxu0 %v4021_v19  ;;  %v4414_v1 = vsub.f32 1.0, %v3848_v63  ;;  %v4050_v36 = vadd.f32 %v1613_v29, %v1581_v4  ;;  %v2814_v27 = vpop.eup %2813 }
 0x1c2   : > { %v1463_v21 = vpop.f32.mrf.mxu1  ;;  %2578 = vmatmul.mubr.f32.gmra.mxu0 %v4033_v14  ;;  %v1583_v59 = vmul.f32 %v3858_v35, %v1221_v25  ;;  %v1231_v33 = vadd.f32 %v3982_v28, %v3839_v57  ;;  %2829 = vpow2.f32 %v2216_v8  ;;  %v1057_v6 = vsub.f32 1.0, %v3959_v0 }
 0x1c3   : > { %v1464_v51 = vadd.f32 %v3890_v12, %v1463_v21  ;;  %v4040_v34 = vadd.f32 %v1612_v47, %v1580_v56  ;;  %v1615_v20 = vmul.f32 %v1469_v23, %v4413_v10  ;;  %2831 = vrcp.f32 %v969_v5  ;;  %v2816_v50 = vpop.eup %2815 }
 0x1c4   : > { %v2508_v7 = vpop.f32.mrf.mxu1  ;;  %v970_v13 = vadd.f32 1.0, %v2810_v53  ;;  %v971_v48 = vadd.f32 1.0, %v2812_v37  ;;  %v1584_v35 = vmul.f32 %v3865_v30, %v1226_v22  ;;  %v1236_v52 = vadd.f32 %v3839_v57, %v1235_v54 }
 0x1c5   : > { %v1614_v58 = vmul.f32 %v1464_v51, %v4414_v1  ;;  %v1479_v31 = vadd.f32 %v2508_v7, %v3890_v12  ;;  %2580 = vmatprep.mubr.f32.mxu0 %v4040_v34  ;;  %2833 = vpow2.f32 %v2215_v60  ;;  %v4415_v40 = vsub.f32 1.0, %v3865_v30  ;;  %v4072_v51 = vpop.eup %2817 }
 0x1c6   : > { %v1473_v56 = vpop.f32.mrf.mxu1  ;;  %2581 = vmatmul.mubr.f32.gmra.mxu0 %v4050_v36  ;;  %v4066_v53 = vadd.f32 %v1615_v20, %v1583_v59  ;;  %v1585_v4 = vmul.f32 %v3959_v0, %v1231_v33  ;;  %v1241_v25 = vadd.f32 %v2431_v24, %v3839_v57  ;;  %v1059_v8 = vsub.f32 1.0, %v3973_v55 }
 0x1c7   : > { %v1474_v63 = vadd.f32 %v3890_v12, %v1473_v56  ;;  %v4058_v16 = vadd.f32 %v1614_v58, %v1582_v44  ;;  %v1617_v29 = vmul.f32 %v1479_v31, %v1057_v6  ;;  %v1058_v21 = vsub.f32 1.0, %v3967_v26  ;;  %v2820_v60 = vpop.eup %2819 }
 0x1c8   : > { %v2511_v28 = vpop.f32.mrf.mxu1  ;;  %2835 = vrcp.f32 %v970_v13  ;;  %v972_v30 = vadd.f32 1.0, %v2814_v27  ;;  %v973_v0 = vadd.f32 1.0, %v2816_v50  ;;  %v1586_v24 = vmul.f32 %v3967_v26, %v1236_v52 }
 0x1c9   : > { %v1616_v47 = vmul.f32 %v1474_v63, %v4415_v40  ;;  %v1489_v23 = vadd.f32 %v2511_v28, %v3890_v12  ;;  %2583 = vmatprep.mubr.f32.mxu0 %v4058_v16  ;;  %2837 = vrcp.f32 %v971_v48  ;;  %v2822_v37 = vpop.eup %2821  ;;  %v4081_v1 = vadd.f32 %v1617_v29, %v1585_v4 }
 0x1ca   : > { %v1483_v5 = vpop.f32.mrf.mxu1  ;;  %2584 = vmatmul.mubr.f32.gmra.mxu0 %v4066_v53  ;;  %v1246_v58 = vadd.f32 %v3839_v57, %v3729_v11  ;;  %v1587_v31 = vmul.f32 %v3973_v55, %v1241_v25  ;;  %v1061_v59 = vsub.f32 1.0, %v4004_v17  ;;  %v1060_v33 = vsub.f32 1.0, %v3997_v32  ;;  %v2824_v6 = vpop.eup %2823 }
 0x1cb   : > { %v1484_v44 = vadd.f32 %v3890_v12, %v1483_v5  ;;  %v4076_v22 = vadd.f32 %v1616_v47, %v1584_v35  ;;  %v1619_v54 = vmul.f32 %v1489_v23, %v1059_v8  ;;  %2839 = vrcp.f32 %v972_v30  ;;  %v2826_v63 = vpop.eup %2825 }
 0x1cc   : > { %v2514_v7 = vpop.f32.mrf.mxu1  ;;  %v974_v56 = vadd.f32 1.0, %v2820_v60  ;;  %v1251_v11 = vadd.f32 %v3723_v39, %v3839_v57  ;;  %v1588_v55 = vmul.f32 %v3997_v32, %v1246_v58  ;;  %2841 = vrcp.f32 %v973_v0 }
 0x1cd   : > { %v1618_v10 = vmul.f32 %v1484_v44, %v1058_v21  ;;  %v1499_v20 = vadd.f32 %v2514_v7, %v3890_v12  ;;  %2586 = vmatprep.mubr.f32.mxu0 %v4076_v22  ;;  %v975_v50 = vadd.f32 1.0, %v2822_v37  ;;  %v2828_v35 = vpop.eup %2827  ;;  %v4097_v40 = vadd.f32 %v1619_v54, %v1587_v31 }
 0x1ce   : > { %v1493_v26 = vpop.f32.mrf.mxu1  ;;  %2587 = vmatmul.mubr.f32.gmra.mxu0 %v4081_v1  ;;  %v1589_v47 = vmul.f32 %v4004_v17, %v1251_v11  ;;  %v1256_v23 = vadd.f32 %v3839_v57, %v3747_v49  ;;  %v977_v39 = vadd.f32 1.0, %v2824_v6  ;;  %v1062_v32 = vsub.f32 1.0, %v4016_v62 }
 0x1cf   : > { %v1494_v27 = vadd.f32 %v3890_v12, %v1493_v26  ;;  %v4090_v13 = vadd.f32 %v1618_v10, %v1586_v24  ;;  %v1621_v52 = vmul.f32 %v1499_v20, %v1061_v59  ;;  %v2830_v25 = vpop.eup %2829  ;;  %2843 = vrcp.f32 %v974_v56 }
 0x1d0   : > { %v2517_v48 = vpop.f32.mrf.mxu1  ;;  %v1063_v8 = vsub.f32 1.0, %v4072_v51  ;;  %v2832_v30 = vpop.eup %2831  ;;  %v1261_v17 = vadd.f32 %v3741_v43, %v3839_v57  ;;  %v1590_v49 = vmul.f32 %v4016_v62, %v1256_v23  ;;  %2845 = vrcp.f32 %v975_v50 }
 0x1d1   : > { %v1620_v28 = vmul.f32 %v1494_v27, %v1060_v33  ;;  %v1509_v29 = vadd.f32 %v2517_v48, %v3890_v12  ;;  %2589 = vmatprep.mubr.f32.mxu0 %v4090_v13  ;;  %v976_v44 = vadd.f32 1.0, %v2828_v35  ;;  %v4113_v54 = vadd.f32 %v1621_v52, %v1589_v47 }
 0x1d2   : > { %v1503_v4 = vpop.f32.mrf.mxu1  ;;  %2590 = vmatmul.mubr.f32.gmra.mxu0 %v4097_v40  ;;  %v2834_v0 = vpop.eup %2833  ;;  %v1591_v10 = vmul.f32 %v4072_v51, %v1261_v17  ;;  %v1266_v20 = vadd.f32 %v3839_v57, %v3766_v41  ;;  %2847 = vrcp.f32 %v977_v39  ;;  %v979_v43 = vadd.f32 1.0, %v2830_v25 }
 0x1d3   : > { %v1504_v21 = vadd.f32 %v3890_v12, %v1503_v4  ;;  %v4106_v5 = vadd.f32 %v1620_v28, %v1588_v55  ;;  %v1623_v24 = vmul.f32 %v1509_v29, %v1063_v8  ;;  %v1065_v58 = vsub.f32 1.0, %v2832_v30 }
 0x1d4   : > { %v2520_v60 = vpop.f32.mrf.mxu1  ;;  %v1064_v31 = vsub.f32 1.0, %v2826_v63  ;;  %v1271_v6 = vadd.f32 %v3758_v61, %v3839_v57  ;;  %v1592_v56 = vmul.f32 %v2826_v63, %v1266_v20  ;;  %2849 = vrcp.f32 %v976_v44 }
 0x1d5   : > { %v1622_v7 = vmul.f32 %v1504_v21, %v1062_v32  ;;  %v1519_v37 = vadd.f32 %v2520_v60, %v3890_v12  ;;  %2592 = vmatprep.mubr.f32.mxu0 %v4106_v5  ;;  %v2836_v26 = vpop.eup %2835  ;;  %v978_v51 = vadd.f32 1.0, %v2834_v0  ;;  %v4126_v48 = vadd.f32 %v1623_v24, %v1591_v10 }
 0x1d6   : > { %v1513_v62 = vpop.f32.mrf.mxu1  ;;  %2593 = vmatmul.mubr.f32.gmra.mxu0 %v4113_v54  ;;  %v2838_v41 = vpop.eup %2837  ;;  %v1593_v35 = vmul.f32 %v2832_v30, %v1271_v6  ;;  %v1276_v52 = vadd.f32 %v3839_v57, %v3783_v46  ;;  %2851 = vrcp.f32 %v979_v43  ;;  %v1066_v63 = vsub.f32 1.0, %v2836_v26  ;;  %v4417_v6 = vld [vmem:[#allocation23_spill] sm:$0xff] }
 0x1d7   : > { %v1514_v59 = vadd.f32 %v3890_v12, %v1513_v62  ;;  %v4120_v33 = vadd.f32 %v1622_v7, %v1590_v49  ;;  %v1625_v11 = vmul.f32 %v1519_v37, %v1065_v58  ;;  %v1067_v61 = vsub.f32 1.0, %v2838_v41  ;;  %v4416_v37 = vld [vmem:[#allocation21_spill] sm:$0xff] }
 0x1d8   : > { %v2523_v27 = vpop.f32.mrf.mxu1  ;;  %v2840_v23 = vpop.eup %2839  ;;  %v1281_v39 = vadd.f32 %v3773_v18, %v3839_v57  ;;  %v1594_v32 = vmul.f32 %v2836_v26, %v1276_v52  ;;  %2853 = vrcp.f32 %v978_v51  ;;  %v1286_v49 = vadd.f32 %v3839_v57, %v3803_v45 }
 0x1d9   : > { %v1624_v55 = vmul.f32 %v1514_v59, %v1064_v31  ;;  %v1529_v50 = vadd.f32 %v2523_v27, %v3890_v12  ;;  %2595 = vmatprep.mubr.f32.mxu0 %v4120_v33  ;;  %v2842_v25 = vpop.eup %2841  ;;  %v4138_v30 = vadd.f32 %v1625_v11, %v1593_v35  ;;  %v1068_v0 = vsub.f32 1.0, %v2840_v23  ;;  %v4418_v35 = vld [vmem:[#allocation22_spill] sm:$0xff] }
 0x1da   : > { %v1523_v28 = vpop.f32.mrf.mxu1  ;;  %2596 = vmatmul.mubr.f32.gmra.mxu0 %v4126_v48  ;;  %v1595_v17 = vmul.f32 %v2838_v41, %v1281_v39  ;;  %v1069_v60 = vsub.f32 1.0, %v2842_v25  ;;  %v1291_v10 = vadd.f32 %v4416_v37, %v3839_v57  ;;  %v1596_v20 = vmul.f32 %v2840_v23, %v1286_v49 }
 0x1db   : > { %v1524_v29 = vadd.f32 %v3890_v12, %v1523_v28  ;;  %v4132_v47 = vadd.f32 %v1624_v55, %v1592_v56  ;;  %v1627_v8 = vmul.f32 %v1529_v50, %v1067_v61  ;;  %v1296_v56 = vadd.f32 %v3839_v57, %v4417_v6 }
 0x1dc   : > { %v2526_v4 = vpop.f32.mrf.mxu1  ;;  %v2844_v7 = vpop.eup %2843  ;;  %v1597_v26 = vmul.f32 %v2842_v25, %v1291_v10  ;;  %v1301_v52 = vadd.f32 %v4418_v35, %v3839_v57  ;;  %v4419_v25 = vld [vmem:[#allocation25_spill] sm:$0xff] }
 0x1dd   : > { %v1626_v46 = vmul.f32 %v1524_v29, %v1066_v63  ;;  %v1539_v21 = vadd.f32 %v2526_v4, %v3890_v12  ;;  %2598 = vmatprep.mubr.f32.mxu0 %v4132_v47  ;;  %v2846_v62 = vpop.eup %2845  ;;  %v4150_v59 = vadd.f32 %v1627_v8, %v1595_v17  ;;  %v1070_v11 = vsub.f32 1.0, %v2844_v7 }
 0x1de   : > { %v1533_v44 = vpop.f32.mrf.mxu1  ;;  %2599 = vmatmul.mubr.f32.gmra.mxu0 %v4138_v30  ;;  %v1071_v41 = vsub.f32 1.0, %v2846_v62  ;;  %v1598_v28 = vmul.f32 %v2844_v7, %v1296_v56  ;;  %v1306_v8 = vadd.f32 %v3839_v57, %v4419_v25 }
 0x1df   : > { %v1534_v18 = vadd.f32 %v3890_v12, %v1533_v44  ;;  %v4144_v24 = vadd.f32 %v1626_v46, %v1594_v32  ;;  %v1629_v58 = vmul.f32 %v1539_v21, %v1069_v60  ;;  %v2848_v27 = vpop.eup %2847  ;;  %v1599_v60 = vmul.f32 %v2846_v62, %v1301_v52 }
 0x1e0   : > { %v2529_v43 = vpop.f32.mrf.mxu1  ;;  %v1073_v61 = vsub.f32 1.0, %v2848_v27 }
 0x1e1   : > { %v1628_v31 = vmul.f32 %v1534_v18, %v1068_v0  ;;  %v1549_v45 = vadd.f32 %v2529_v43, %v3890_v12  ;;  %2601 = vmatprep.mubr.f32.mxu0 %v4144_v24  ;;  %v2850_v29 = vpop.eup %2849  ;;  %v4162_v4 = vadd.f32 %v1629_v58, %v1597_v26  ;;  %v4420_v0 = vld [vmem:[#allocation24_spill] sm:$0xff]  ;;  %v4421_v26 = vld [vmem:[#allocation27_spill] sm:$0xff] }
 0x1e2   : > { %v1543_v51 = vpop.f32.mrf.mxu1  ;;  %2602 = vmatmul.mubr.f32.gmra.mxu0 %v4150_v59  ;;  %v1072_v17 = vsub.f32 1.0, %v2850_v29  ;;  %v1311_v18 = vadd.f32 %v4420_v0, %v3839_v57  ;;  %v1600_v10 = vmul.f32 %v2850_v29, %v1306_v8  ;;  %v1316_v6 = vadd.f32 %v3839_v57, %v4421_v26 }
 0x1e3   : > { %v1544_v55 = vadd.f32 %v3890_v12, %v1543_v51  ;;  %v4156_v50 = vadd.f32 %v1628_v31, %v1596_v20  ;;  %v1631_v23 = vmul.f32 %v1549_v45, %v1071_v41  ;;  %v2852_v21 = vpop.eup %2851 }
 0x1e4   : > { %v2532_v63 = vpop.f32.mrf.mxu1  ;;  %v1075_v7 = vsub.f32 1.0, %v2852_v21 }
 0x1e5   : > { %v1630_v39 = vmul.f32 %v1544_v55, %v1070_v11  ;;  %v1559_v32 = vadd.f32 %v2532_v63, %v3890_v12  ;;  %2604 = vmatprep.mubr.f32.mxu0 %v4156_v50  ;;  %v2854_v20 = vpop.eup %2853  ;;  %v4174_v45 = vadd.f32 %v1631_v23, %v1599_v60  ;;  %v1601_v11 = vmul.f32 %v2848_v27, %v1311_v18  ;;  %v4422_v55 = vld [vmem:[#allocation26_spill] sm:$0xff] }
 0x1e6   : > { %v1553_v46 = vpop.f32.mrf.mxu1  ;;  %2605 = vmatmul.mubr.f32.gmra.mxu0 %v4162_v4  ;;  %v1074_v62 = vsub.f32 1.0, %v2854_v20  ;;  %v1321_v35 = vadd.f32 %v4422_v55, %v3839_v57  ;;  %v1602_v63 = vmul.f32 %v2854_v20, %v1316_v6  ;;  %v4197_v57 = vld [vmem:[%s4369_s10] ss:$0 sm:$0xff] }
 0x1e7   : > { %v1554_v49 = vadd.f32 %v3890_v12, %v1553_v46  ;;  %v4168_v44 = vadd.f32 %v1630_v39, %v1598_v28  ;;  %v1633_v43 = vmul.f32 %v1559_v32, %v1073_v61 }
 0x1e8   : > { %v2535_v37 = vpop.f32.mrf.mxu1 }
 0x1e9   : > { %v1632_v58 = vmul.f32 %v1554_v49, %v1072_v17  ;;  %v1569_v31 = vadd.f32 %v2535_v37, %v3890_v12  ;;  %2607 = vmatprep.mubr.f32.mxu0 %v4168_v44  ;;  %v4185_v61 = vadd.f32 %v1633_v43, %v1601_v11 }
 0x1ea   : > { %v1563_v56 = vpop.f32.mrf.mxu1  ;;  %2608 = vmatmul.mubr.f32.gmra.mxu0 %v4174_v45 }
 0x1eb   : > { %v1564_v51 = vadd.f32 %v3890_v12, %v1563_v56  ;;  %v4180_v41 = vadd.f32 %v1632_v58, %v1600_v10  ;;  %v1635_v52 = vmul.f32 %v1569_v31, %v1075_v7  ;;  %v1603_v12 = vmul.f32 %v2852_v21, %v1321_v35 }
 0x1ed   : > { %v1634_v28 = vmul.f32 %v1564_v51, %v1074_v62  ;;  %2610 = vmatprep.mubr.f32.mxu0 %v4180_v41  ;;  %v4191_v23 = vadd.f32 %v1635_v52, %v1603_v12 }
 0x1ee   : > { %2611 = vmatmul.mubr.f32.gmra.mxu0 %v4185_v61 }
 0x1ef   : > { %v4188_v29 = vadd.f32 %v1634_v28, %v1602_v63 }
 0x1f1   : > { %2613 = vmatprep.mubr.f32.mxu0 %v4188_v29 }
 0x1f2   : > { %2614 = vmatmul.mubr.f32.gmra.mxu0 %v4191_v23 }
 0x276   : > { %v2570_v27 = vpop.f32.mrf.mxu0 }
 0x277   : > { %v1763_v39 = vadd.f32 %v2570_v27, %v4197_v57 }
 0x278   : > { %v1757_v32 = vpop.f32.mrf.mxu0 }
 0x279   : > { %v1917_v25 = vmax.f32 %v1763_v39, 0.0  ;;  %v1758_v8 = vadd.f32 %v4197_v57, %v1757_v32 }
 0x27a   : > { %v2573_v46 = vpop.f32.mrf.mxu0 }
 0x27b   : > { %v1949_v21 = vadd.f32 %v1917_v25, %v3947_v2  ;;  %v1916_v17 = vmax.f32 %v1758_v8, 0.0  ;;  %v1773_v49 = vadd.f32 %v2573_v46, %v4197_v57 }
 0x27c   : > { %v1767_v60 = vpop.f32.mrf.mxu0 }
 0x27d   : > { %1981 = vst [vmem:[%s4204_s16 + $0x8] sm:$0xff] %v1949_v21  ;;  %v1948_v0 = vadd.f32 %v1916_v17, %v3943_v38  ;;  %v1919_v18 = vmax.f32 %v1773_v49, 0.0  ;;  %v1768_v7 = vadd.f32 %v4197_v57, %v1767_v60 }
 0x27e   : > { %v2576_v10 = vpop.f32.mrf.mxu0 }
 0x27f   : > { %1980 = vst [vmem:[%s4204_s16] sm:$0xff] %v1948_v0  ;;  %v1951_v2 = vadd.f32 %v1919_v18, %v3979_v3  ;;  %v1918_v37 = vmax.f32 %v1768_v7, 0.0  ;;  %v1783_v20 = vadd.f32 %v2576_v10, %v4197_v57 }
 0x280   : > { %v1777_v58 = vpop.f32.mrf.mxu0 }
 0x281   : > { %1983 = vst [vmem:[%s4204_s16 + $0x18] sm:$0xff] %v1951_v2  ;;  %v1950_v43 = vadd.f32 %v1918_v37, %v3971_v42  ;;  %v1921_v31 = vmax.f32 %v1783_v20, 0.0  ;;  %v1778_v26 = vadd.f32 %v4197_v57, %v1777_v58 }
 0x282   : > { %v2579_v38 = vpop.f32.mrf.mxu0 }
 0x283   : > { %1982 = vst [vmem:[%s4204_s16 + $0x10] sm:$0xff] %v1950_v43  ;;  %v1953_v6 = vadd.f32 %v1921_v31, %v4012_v9  ;;  %v1920_v56 = vmax.f32 %v1778_v26, 0.0  ;;  %v1793_v3 = vadd.f32 %v2579_v38, %v4197_v57 }
 0x284   : > { %v1787_v62 = vpop.f32.mrf.mxu0 }
 0x285   : > { %1985 = vst [vmem:[%s4204_s16 + $0x28] sm:$0xff] %v1953_v6  ;;  %v1952_v51 = vadd.f32 %v1920_v56, %v4002_v15  ;;  %v1923_v11 = vmax.f32 %v1793_v3, 0.0  ;;  %v1788_v42 = vadd.f32 %v4197_v57, %v1787_v62 }
 0x286   : > { %v2582_v55 = vpop.f32.mrf.mxu0 }
 0x287   : > { %1984 = vst [vmem:[%s4204_s16 + $0x20] sm:$0xff] %v1952_v51  ;;  %v1955_v35 = vadd.f32 %v1923_v11, %v4033_v14  ;;  %v1922_v52 = vmax.f32 %v1788_v42, 0.0  ;;  %v1803_v28 = vadd.f32 %v2582_v55, %v4197_v57 }
 0x288   : > { %v1797_v9 = vpop.f32.mrf.mxu0 }
 0x289   : > { %1987 = vst [vmem:[%s4204_s16 + $0x38] sm:$0xff] %v1955_v35  ;;  %v1954_v63 = vadd.f32 %v1922_v52, %v4021_v19  ;;  %v1925_v12 = vmax.f32 %v1803_v28, 0.0  ;;  %v1798_v27 = vadd.f32 %v4197_v57, %v1797_v9 }
 0x28a   : > { %v2585_v15 = vpop.f32.mrf.mxu0 }
 0x28b   : > { %1986 = vst [vmem:[%s4204_s16 + $0x30] sm:$0xff] %v1954_v63  ;;  %v1957_v39 = vadd.f32 %v1925_v12, %v4050_v36  ;;  %v1924_v32 = vmax.f32 %v1798_v27, 0.0  ;;  %v1813_v25 = vadd.f32 %v2585_v15, %v4197_v57 }
 0x28c   : > { %v1807_v14 = vpop.f32.mrf.mxu0 }
 0x28d   : > { %1989 = vst [vmem:[%s4204_s16 + $0x48] sm:$0xff] %v1957_v39  ;;  %v1956_v8 = vadd.f32 %v1924_v32, %v4040_v34  ;;  %v1927_v46 = vmax.f32 %v1813_v25, 0.0  ;;  %v1808_v21 = vadd.f32 %v4197_v57, %v1807_v14 }
 0x28e   : > { %v2588_v19 = vpop.f32.mrf.mxu0 }
 0x28f   : > { %1988 = vst [vmem:[%s4204_s16 + $0x40] sm:$0xff] %v1956_v8  ;;  %v1959_v17 = vadd.f32 %v1927_v46, %v4066_v53  ;;  %v1926_v49 = vmax.f32 %v1808_v21, 0.0  ;;  %v1823_v60 = vadd.f32 %v2588_v19, %v4197_v57 }
 0x290   : > { %v1817_v36 = vpop.f32.mrf.mxu0 }
 0x291   : > { %1991 = vst [vmem:[%s4204_s16 + $0x58] sm:$0xff] %v1959_v17  ;;  %v1958_v0 = vadd.f32 %v1926_v49, %v4058_v16  ;;  %v1929_v18 = vmax.f32 %v1823_v60, 0.0  ;;  %v1818_v7 = vadd.f32 %v4197_v57, %v1817_v36 }
 0x292   : > { %v2591_v34 = vpop.f32.mrf.mxu0 }
 0x293   : > { %1990 = vst [vmem:[%s4204_s16 + $0x50] sm:$0xff] %v1958_v0  ;;  %v1961_v2 = vadd.f32 %v1929_v18, %v4081_v1  ;;  %v1928_v37 = vmax.f32 %v1818_v7, 0.0  ;;  %v1833_v10 = vadd.f32 %v2591_v34, %v4197_v57 }
 0x294   : > { %v1827_v53 = vpop.f32.mrf.mxu0 }
 0x295   : > { %1993 = vst [vmem:[%s4204_s16 + $0x68] sm:$0xff] %v1961_v2  ;;  %v1960_v20 = vadd.f32 %v1928_v37, %v4076_v22  ;;  %v1931_v43 = vmax.f32 %v1833_v10, 0.0  ;;  %v1828_v58 = vadd.f32 %v4197_v57, %v1827_v53 }
 0x296   : > { %v2594_v16 = vpop.f32.mrf.mxu0 }
 0x297   : > { %1992 = vst [vmem:[%s4204_s16 + $0x60] sm:$0xff] %v1960_v20  ;;  %v1963_v31 = vadd.f32 %v1931_v43, %v4097_v40  ;;  %v1930_v26 = vmax.f32 %v1828_v58, 0.0  ;;  %v1843_v38 = vadd.f32 %v2594_v16, %v4197_v57 }
 0x298   : > { %v1837_v1 = vpop.f32.mrf.mxu0 }
 0x299   : > { %1995 = vst [vmem:[%s4204_s16 + $0x78] sm:$0xff] %v1963_v31  ;;  %v1962_v6 = vadd.f32 %v1930_v26, %v4090_v13  ;;  %v1933_v56 = vmax.f32 %v1843_v38, 0.0  ;;  %v1838_v3 = vadd.f32 %v4197_v57, %v1837_v1 }
 0x29a   : > { %v2597_v22 = vpop.f32.mrf.mxu0 }
 0x29b   : > { %1994 = vst [vmem:[%s4204_s16 + $0x70] sm:$0xff] %v1962_v6  ;;  %v1965_v62 = vadd.f32 %v1933_v56, %v4113_v54  ;;  %v1932_v51 = vmax.f32 %v1838_v3, 0.0  ;;  %v1853_v11 = vadd.f32 %v2597_v22, %v4197_v57 }
 0x29c   : > { %v1847_v40 = vpop.f32.mrf.mxu0 }
 0x29d   : > { %1997 = vst [vmem:[%s4204_s16 + $0x88] sm:$0xff] %v1965_v62  ;;  %v1964_v42 = vadd.f32 %v1932_v51, %v4106_v5  ;;  %v1935_v55 = vmax.f32 %v1853_v11, 0.0  ;;  %v1848_v35 = vadd.f32 %v4197_v57, %v1847_v40 }
 0x29e   : > { %v2600_v13 = vpop.f32.mrf.mxu0 }
 0x29f   : > { %1996 = vst [vmem:[%s4204_s16 + $0x80] sm:$0xff] %v1964_v42  ;;  %v1967_v52 = vadd.f32 %v1935_v55, %v4126_v48  ;;  %v1934_v28 = vmax.f32 %v1848_v35, 0.0  ;;  %v1863_v9 = vadd.f32 %v2600_v13, %v4197_v57 }
 0x2a0   : > { %v1857_v54 = vpop.f32.mrf.mxu0 }
 0x2a1   : > { %1999 = vst [vmem:[%s4204_s16 + $0x98] sm:$0xff] %v1967_v52  ;;  %v1966_v63 = vadd.f32 %v1934_v28, %v4120_v33  ;;  %v1937_v12 = vmax.f32 %v1863_v9, 0.0  ;;  %v1858_v27 = vadd.f32 %v4197_v57, %v1857_v54 }
 0x2a2   : > { %v2603_v5 = vpop.f32.mrf.mxu0 }
 0x2a3   : > { %1998 = vst [vmem:[%s4204_s16 + $0x90] sm:$0xff] %v1966_v63  ;;  %v1969_v15 = vadd.f32 %v1937_v12, %v4138_v30  ;;  %v1936_v39 = vmax.f32 %v1858_v27, 0.0  ;;  %v1873_v32 = vadd.f32 %v2603_v5, %v4197_v57 }
 0x2a4   : > { %v1867_v48 = vpop.f32.mrf.mxu0 }
 0x2a5   : > { %2001 = vst [vmem:[%s4204_s16 + $0xa8] sm:$0xff] %v1969_v15  ;;  %v1968_v25 = vadd.f32 %v1936_v39, %v4132_v47  ;;  %v1939_v14 = vmax.f32 %v1873_v32, 0.0  ;;  %v1868_v8 = vadd.f32 %v4197_v57, %v1867_v48 }
 0x2a6   : > { %v2606_v33 = vpop.f32.mrf.mxu0 }
 0x2a7   : > { %2000 = vst [vmem:[%s4204_s16 + $0xa0] sm:$0xff] %v1968_v25  ;;  %v1971_v46 = vadd.f32 %v1939_v14, %v4150_v59  ;;  %v1938_v21 = vmax.f32 %v1868_v8, 0.0  ;;  %v1883_v19 = vadd.f32 %v2606_v33, %v4197_v57 }
 0x2a8   : > { %v1877_v30 = vpop.f32.mrf.mxu0 }
 0x2a9   : > { %2003 = vst [vmem:[%s4204_s16 + $0xb8] sm:$0xff] %v1971_v46  ;;  %v1970_v17 = vadd.f32 %v1938_v21, %v4144_v24  ;;  %v1941_v49 = vmax.f32 %v1883_v19, 0.0  ;;  %v1878_v60 = vadd.f32 %v4197_v57, %v1877_v30 }
 0x2aa   : > { %v2609_v47 = vpop.f32.mrf.mxu0 }
 0x2ab   : > { %2002 = vst [vmem:[%s4204_s16 + $0xb0] sm:$0xff] %v1970_v17  ;;  %v1973_v36 = vadd.f32 %v1941_v49, %v4162_v4  ;;  %v1940_v0 = vmax.f32 %v1878_v60, 0.0  ;;  %v1893_v18 = vadd.f32 %v2609_v47, %v4197_v57 }
 0x2ac   : > { %v1887_v59 = vpop.f32.mrf.mxu0 }
 0x2ad   : > { %2005 = vst [vmem:[%s4204_s16 + $0xc8] sm:$0xff] %v1973_v36  ;;  %v1972_v7 = vadd.f32 %v1940_v0, %v4156_v50  ;;  %v1943_v34 = vmax.f32 %v1893_v18, 0.0  ;;  %v1888_v2 = vadd.f32 %v4197_v57, %v1887_v59 }
 0x2ae   : > { %v2612_v24 = vpop.f32.mrf.mxu0 }
 0x2af   : > { %2004 = vst [vmem:[%s4204_s16 + $0xc0] sm:$0xff] %v1972_v7  ;;  %v1975_v37 = vadd.f32 %v1943_v34, %v4174_v45  ;;  %v1942_v10 = vmax.f32 %v1888_v2, 0.0  ;;  %v1903_v53 = vadd.f32 %v2612_v24, %v4197_v57 }
 0x2b0   : > { %v1897_v4 = vpop.f32.mrf.mxu0 }
 0x2b1   : > { %2007 = vst [vmem:[%s4204_s16 + $0xd8] sm:$0xff] %v1975_v37  ;;  %v1974_v20 = vadd.f32 %v1942_v10, %v4168_v44  ;;  %v1945_v43 = vmax.f32 %v1903_v53, 0.0  ;;  %v1898_v50 = vadd.f32 %v4197_v57, %v1897_v4 }
 0x2b2   : > { %v2615_v58 = vpop.f32.mrf.mxu0 }
 0x2b3   : > { %2006 = vst [vmem:[%s4204_s16 + $0xd0] sm:$0xff] %v1974_v20  ;;  %v1977_v16 = vadd.f32 %v1945_v43, %v4185_v61  ;;  %v1944_v31 = vmax.f32 %v1898_v50, 0.0  ;;  %v1913_v45 = vadd.f32 %v2615_v58, %v4197_v57 }
 0x2b4   : > { %v1907_v26 = vpop.f32.mrf.mxu0 }
 0x2b5   : > { %2009 = vst [vmem:[%s4204_s16 + $0xe8] sm:$0xff] %v1977_v16  ;;  %v1976_v38 = vadd.f32 %v1944_v31, %v4180_v41  ;;  %v1947_v1 = vmax.f32 %v1913_v45, 0.0  ;;  %v1908_v44 = vadd.f32 %v4197_v57, %v1907_v26 }
 0x2b7   : > { %2008 = vst [vmem:[%s4204_s16 + $0xe0] sm:$0xff] %v1976_v38  ;;  %v1979_v6 = vadd.f32 %v1947_v1, %v4191_v23  ;;  %v1946_v56 = vmax.f32 %v1908_v44, 0.0  ;;  %2019 = sbr.rel (!%p4423_p3) target bundleno = 727 (0x2d7), region = 88 }
 0x2b9   : > { %2011 = vst [vmem:[%s4204_s16 + $0xf8] sm:$0xff] %v1979_v6  ;;  %v1978_v3 = vadd.f32 %v1946_v56, %v4188_v29 }
 0x2bb   : > { %2010 = vst [vmem:[%s4204_s16 + $0xf0] sm:$0xff] %v1978_v3 }
 0x2bc   : > { %s4436_s26 = smov (!%p2022_p7, %s2021_s26), 32 }
 0x2bd   : > { %s4302_s24 = sshll.u32 %s4436_s26, 7 }
 0x2be   : > { %s2026_s29 = ssub.s32 4096, %s4302_s24 }
 0x2bf   : > { %2027 = vsyncadd %s2013_s18, %s2026_s29  ;;  %p2223_p0 = scmp.ne.s32.totalorder %s4302_s24, 0  ;;  %s2231_s30 = sshll.u32 %s3161_s4, 12 }
 0x2c0   : > { %s4312_s25 = scalar_lea.hbm %s4370_s11, %s2231_s30  ;;  %s2032_s15 = sshll.u32 %s4204_s16, 4  ;;  %s4315_s15 = int_to_ptr.vmem [resolvable:$true] %s2032_s15 }
 0x2c1   : > { %s2985_s5 = scalar_lea.vmem %s4315_s15, %s4302_s24  ;;  %s3074_s28 = smov [#allocation12]  }
 0x2c2   : > { %p2986_p9 = scmp.ne.s32.totalorder %s4315_s15, %s2985_s5  ;;  %s2989_s27 = sshll.u32 %s3074_s28, 4  ;;  %s2990_s27 = int_to_ptr.vmem [resolvable:$false] %s2989_s27 }
 0x2c3   : > { %s2991_s4 = scalar_lea.vmem %s2990_s27, 8192  ;;  %p2992_p4 = scmp.lt.s32.totalorder %s4315_s15, %s2990_s27 }
 0x2c4   : > { %p2987_p8 = pnand %p2986_p9, %p2223_p0  ;;  %p2993_p2 = scmp.lt.s32.totalorder %s2991_s4, %s2985_s5 }
 0x2c6   : > { %p2988_p12 = pneg %p2987_p8  ;;  %p2994_p10 = por %p2993_p2, %p2992_p4 }
 0x2c8   : > { %p2995_p1 = pnand %p2994_p10, %p2988_p12 }
 0x2ca   : > { %2998 = shalt.err (!%p2995_p1)
}
 0x2cb   : > { %s2999_s23 = scalar_lea.hbm %s4312_s25, %s4302_s24  ;;  %s3003_s16 = scalar_lea.hbm %s4370_s11, 8320 }
 0x2cc   : > { %p3000_p13 = scmp.ne.s32.totalorder %s4312_s25, %s2999_s23  ;;  %p3004_p11 = scmp.lt.s32.totalorder %s4312_s25, %s4370_s11 }
 0x2cd   : > { %p3005_p3 = scmp.lt.s32.totalorder %s3003_s16, %s2999_s23 }
 0x2ce   : > { %p3001_p5 = pnand %p3000_p13, %p2223_p0 }
 0x2cf   : > { %p3006_p7 = por %p3005_p3, %p3004_p11 }
 0x2d0   : > { %p3002_p6 = pneg %p3001_p5 }
 0x2d2   : > { %p3007_p9 = pnand %p3006_p7, %p3002_p6 }
 0x2d4   : > { %3010 = shalt.err (!%p3007_p9)
}
 0x2d5   : > { %s3075_s29 = smov 128   ;;  %s3076_s30 = smov 8  }
 0x2d6   : > { %2038 = dma.vmem_to_hbm [thread:$0]  (%p2223_p0), %s4315_s15, %s4302_s24, %s4312_s25, %s2013_s18, %s3075_s29, %s3075_s29, %s3076_s30  }
 0x2d7 PF: > { %s4424_s17 = sld [smem:[#allocation20_spill]]  ;;  %p2683_p8 = scmp.ge.s32.totalorder %s3061_s22, 2 }
 0x2d8   : > { %s2047_s7 = sand.u32 1, %s3049_s19  }
 0x2d9   : > { %s2048_s5 = scalar_lea.sflag [#allocation5], %s2047_s7 }
 0x2dd   : > { %p4425_p12 = scmp.ne.s32.totalorder %s4424_s17, 0 }
 0x2df   : > { %p2674_p4 = pnand %p2683_p8, %p4425_p12 }
 0x2e1   : > { %p2675_p2 = pneg %p2674_p4 }
 0x2e3   : > { %3044 = dma.done.wait (%p2675_p2), %s2048_s5, 4096  }
 0x2e4   : > { %3046 = vsyncadd (%p2675_p2), %s2048_s5, 4294963200  ;;  %s4426_s22 = sld [smem:[#allocation18_spill]]  ;;  %s4428_s19 = smov %s3053_s20 }
 0x2e5   : > { %s4427_s28 = sld [smem:[#allocation19_spill]]  ;;  %s4429_s20 = smov %s3057_s21 }
 0x2ea   : > { %p29_p10 = scmp.ge.s32.totalorder %s4426_s22, 5  }
 0x2eb   : > { %s4430_s21 = smov %s4427_s28 }
 0x2ec   :  { %31 = sbr.rel (!%p29_p10) target bundleno = 13 (0xd), region = 134 }
 0x2f1   :  { %2053 = vsyncpa [#allocation4], 1 }
 0x2f2   :  { %2055 = vsyncpa [#allocation4 + $0x1], 1 }
 0x2f3   :  { %2056 = vsyncpa [#allocation7], 1 }
 0x2f4   :  { %2058 = vsyncpa [#allocation7 + $0x1], 1 }
 0x2f5   :  { %2059 = vsyncpa [#allocation10], 1 }
 0x2f6   :  { %2060 = vsyncpa [#allocation5], 1 }
 0x2f7   :  { %2062 = vsyncpa [#allocation5 + $0x1], 1 }

</bundles_post_ra>
